<compile_context>
chip_gen: v6e
topology: v6e:2x2x1
jax: 0.10.0
libtpu: 0.0.40
codegen_flags: <defaults>
</compile_context>

<pallas_src>
import functools

import jax
import jax.numpy as jnp
from jax.experimental import pallas as pl
from jax.experimental.pallas import tpu as pltpu


# ---------------------------------------------------------------------------
# Kernel: one encoder layer on a block of Bb sequences.
# ---------------------------------------------------------------------------
def encoder_layer_kernel(x_ref, wqkv_ref, bqkv_ref, wo_ref, bo_ref,
                         w1_ref, b1_ref, w2_ref, b2_ref,
                         ln1w_ref, ln1b_ref, ln2w_ref, ln2b_ref,
                         out_ref, *maybe_attnw, nhead, eps):
    attnw_ref = maybe_attnw[0] if maybe_attnw else None

    Bb, S, E = x_ref.shape                 # (batch-block, seq, d_model)
    hd = E // nhead
    f32 = jnp.float32
    cdt = jnp.bfloat16                     # MXU compute dtype; f32 accumulation everywhere

    x = x_ref[...].astype(f32)             # activations may arrive in bf16 between layers
    xf = x.reshape(Bb * S, E)              # fat M dimension for the MXU
    xc = xf.astype(cdt)

    # ---- fused QKV projection: one (Bb*S, E) @ (E, 3E) bf16 matmul, f32 accum.
    #      Weight pre-transposed on the host; 1/sqrt(hd) folded into the Q third. ----
    qkv = jnp.dot(xc, wqkv_ref[...], preferred_element_type=f32) + bqkv_ref[...]
    qkv = qkv.reshape(Bb, S, 3 * E).astype(cdt)      # leading-dim split only (free)

    # ---- scaled dot-product attention.
    #      nhead lane-slices (independent of Bb); each matmul batched over Bb sequences.
    #      TODO(synk): src_mask / key_padding_mask would be added to s_h here. ----
    p_heads = []
    ctx_heads = []
    for h in range(nhead):
        q_h = qkv[:, :, h * hd:(h + 1) * hd]                     # (Bb, S, hd)
        k_h = qkv[:, :, E + h * hd:E + (h + 1) * hd]
        v_h = qkv[:, :, 2 * E + h * hd:2 * E + (h + 1) * hd]
        s_h = jnp.einsum('bqd,bkd->bqk', q_h, k_h,
                         preferred_element_type=f32)             # (Bb, S, S) f32
        s_h = s_h - jnp.max(s_h, axis=-1, keepdims=True)
        p_h = jnp.exp(s_h)
        # exact normalization: returned attention weights sum to 1 (matches PyTorch)
        p_h = p_h * (1.0 / jnp.sum(p_h, axis=-1, keepdims=True))
        if attnw_ref is not None:
            p_heads.append(p_h)
        ctx_heads.append(jnp.einsum('bqk,bkd->bqd', p_h.astype(cdt), v_h,
                                    preferred_element_type=f32))  # (Bb, S, hd)

    if attnw_ref is not None:
        # Single block store of the whole (Bb, nhead, S, S) tile (bf16 by default).
        attnw_ref[...] = jnp.stack(p_heads, axis=1).astype(attnw_ref.dtype)

    # Merge heads with one minor-dim concat, then a free leading-dim reshape.
    ctx = jnp.concatenate(ctx_heads, axis=-1)                    # (Bb, S, E)
    ctxf = ctx.reshape(Bb * S, E).astype(cdt)

    # ---- output projection ----
    attn_out = jnp.dot(ctxf, wo_ref[...], preferred_element_type=f32) + bo_ref[...]

    # ---- residual + LayerNorm1 (f32; dropout1 == identity in eval) ----
    h1 = xf + attn_out
    mu = jnp.mean(h1, axis=-1, keepdims=True)
    var = jnp.mean((h1 - mu) ** 2, axis=-1, keepdims=True)
    h1 = (h1 - mu) * jax.lax.rsqrt(var + eps) * ln1w_ref[...] + ln1b_ref[...]

    # ---- feed-forward: linear1 -> relu -> (dropout) -> linear2 (bf16 MXU, f32 accum) ----
    ff = jnp.dot(h1.astype(cdt), w1_ref[...], preferred_element_type=f32) + b1_ref[...]
    ff = jnp.maximum(ff, 0.0)
    ff = jnp.dot(ff.astype(cdt), w2_ref[...], preferred_element_type=f32) + b2_ref[...]

    # ---- residual + LayerNorm2 (f32; dropout2 == identity in eval) ----
    h2 = h1 + ff
    mu2 = jnp.mean(h2, axis=-1, keepdims=True)
    var2 = jnp.mean((h2 - mu2) ** 2, axis=-1, keepdims=True)
    h2 = (h2 - mu2) * jax.lax.rsqrt(var2 + eps) * ln2w_ref[...] + ln2b_ref[...]

    out_ref[...] = h2.reshape(Bb, S, E).astype(out_ref.dtype)


# ---------------------------------------------------------------------------
# Host-side weight prep: keep the fused QKV weight, pre-transpose everything to
# (in, out) layout, fold 1/sqrt(head_dim) into the Q third, cast matmul weights to bf16.
# ---------------------------------------------------------------------------
def _prepare_layer_params(params, nhead):
    E = params["wo"].shape[0]
    dim_ff = params["w1"].shape[0]
    hd = E // nhead
    scale = 1.0 / (hd ** 0.5)
    cdt = jnp.bfloat16
    f32 = jnp.float32

    wqkv = params["wqkv"].astype(f32)                     # (3E, E), PyTorch (out, in)
    bqkv = params["bqkv"].reshape(-1).astype(f32)         # (3E,)
    col_scale = jnp.concatenate([jnp.full((E,), scale, f32), jnp.ones((2 * E,), f32)])
    wqkv_t = (wqkv.T * col_scale[None, :]).astype(cdt)    # (E, 3E), scale folded into Q
    bqkv_t = (bqkv * col_scale).reshape(1, 3 * E).astype(f32)

    return dict(
        wqkv=wqkv_t, bqkv=bqkv_t,
        wo=params["wo"].T.astype(cdt), bo=params["bo"].reshape(1, E).astype(f32),
        w1=params["w1"].T.astype(cdt), b1=params["b1"].reshape(1, dim_ff).astype(f32),
        w2=params["w2"].T.astype(cdt), b2=params["b2"].reshape(1, E).astype(f32),
        ln1w=params["ln1w"].reshape(1, E).astype(f32),
        ln1b=params["ln1b"].reshape(1, E).astype(f32),
        ln2w=params["ln2w"].reshape(1, E).astype(f32),
        ln2b=params["ln2b"].reshape(1, E).astype(f32),
    )


def _vmem_limit_bytes():
    # Generation-aware scoped-VMEM limit: ~3/4 of physical, capped at 96 MiB.
    # (v5e/v6e: 128 MiB -> 96 MiB; v7x: 64 MiB -> 48 MiB; fallback 48 MiB.)
    try:
        cap = int(pltpu.get_tpu_info().vmem_capacity_bytes)
    except Exception:  # pragma: no cover - conservative fallback
        cap = 64 * 1024 * 1024
    return min((cap * 3) // 4, 96 * 1024 * 1024)


# ---------------------------------------------------------------------------
# One encoder layer = one pallas_call.  src is batch-first (N, S, E) — the layout
# produced by the module's own torch.transpose(src, 0, 1).
# ---------------------------------------------------------------------------
def transformer_encoder_layer(src, params, *, nhead, eps=1e-5, need_weights=True,
                              batch_block=None, out_dtype=None,
                              attn_weights_dtype=jnp.bfloat16):
    N, S, E = src.shape
    assert E % nhead == 0, "d_model must be divisible by nhead"
    prep = _prepare_layer_params(params, nhead)
    dim_ff = prep["w1"].shape[1]
    out_dtype = src.dtype if out_dtype is None else out_dtype

    if batch_block is None:
        # Fatten the matmul M dimension toward ~512 rows (review: 512-1024 on v6e).
        bb = max(1, min(N, 512 // max(S, 1)))
        # Keep >= 2 grid steps so both v7x TensorCores get work on the parallel axis.
        if N >= 2:
            bb = min(bb, max(1, N // 2))
        while N % bb:
            bb -= 1
    else:
        bb = batch_block
    grid = (N // bb,)

    def _resident(shape):
        # Loop-invariant weights: full-array block, constant index_map, SINGLE-buffered
        # (pl.Buffered(1)) so their VMEM footprint is not doubled by the pipeline.
        zeros = (0,) * len(shape)
        return pl.BlockSpec(shape, lambda b, _z=zeros: _z,
                            pipeline_mode=pl.Buffered(1))

    in_specs = [
        pl.BlockSpec((bb, S, E), lambda b: (b, 0, 0)),       # activations
        _resident((E, 3 * E)), _resident((1, 3 * E)),        # fused Wqkv^T (Q scaled), bqkv
        _resident((E, E)), _resident((1, E)),                # Wo^T, bo
        _resident((E, dim_ff)), _resident((1, dim_ff)),      # W1^T, b1
        _resident((dim_ff, E)), _resident((1, E)),           # W2^T, b2
        _resident((1, E)), _resident((1, E)),                # norm1 w/b
        _resident((1, E)), _resident((1, E)),                # norm2 w/b
    ]

    out_spec_x = pl.BlockSpec((bb, S, E), lambda b: (b, 0, 0))
    out_shape_x = jax.ShapeDtypeStruct((N, S, E), out_dtype)

    if need_weights:
        # bf16 attn weights halve the dominant HBM writeback (and their VMEM tile).
        # TODO(synk): on v7x at long S also single-buffer this output / pad S to 128.
        out_shape = (out_shape_x,
                     jax.ShapeDtypeStruct((N, nhead, S, S), attn_weights_dtype))
        out_specs = (out_spec_x,
                     pl.BlockSpec((bb, nhead, S, S), lambda b: (b, 0, 0, 0)))
    else:
        out_shape = out_shape_x
        out_specs = out_spec_x

    kernel = functools.partial(encoder_layer_kernel, nhead=nhead, eps=eps)

    return pl.pallas_call(
        kernel,
        out_shape=out_shape,
        grid=grid,
        in_specs=in_specs,
        out_specs=out_specs,
        compiler_params=pltpu.CompilerParams(
            dimension_semantics=("parallel",),
            vmem_limit_bytes=_vmem_limit_bytes(),
        ),
    )(src, prep["wqkv"], prep["bqkv"], prep["wo"], prep["bo"],
      prep["w1"], prep["b1"], prep["w2"], prep["b2"],
      prep["ln1w"], prep["ln1b"], prep["ln2w"], prep["ln2b"])


# ---------------------------------------------------------------------------
# TransformerEncoder.forward: pos_encoder -> transpose(0,1) -> N layers.
# Returns (out, stacked per-head attention weights) when need_weights (module default).
# Inter-layer activations travel in bf16; the final layer restores src.dtype.
# ---------------------------------------------------------------------------
def transformer_encoder(src, layer_params, *, nhead, need_weights=True,
                        batch_block=None, interlayer_dtype=jnp.bfloat16,
                        attn_weights_dtype=jnp.bfloat16):
    """src: (S, N, E) seq-first.  Returns ((N, S, E), (num_layers, N, nhead, S, S))."""
    # TODO(synk): pos_encoder is an external module (PositionalEncoding / pos_cnn) not
    # defined in the spec; treated as identity here.
    # TODO(synk): on v5e, cross-call prefetch of the NEXT layer's weights (P10 pattern)
    # would hide per-layer weight DMA behind the previous layer's compute.
    x = jnp.swapaxes(src, 0, 1)                      # module's own once-per-forward transpose

    num_layers = len(layer_params)
    attn = []
    for i, p in enumerate(layer_params):
        od = src.dtype if i == num_layers - 1 else interlayer_dtype
        if need_weights:
            x, w = transformer_encoder_layer(
                x, p, nhead=nhead, need_weights=True, batch_block=batch_block,
                out_dtype=od, attn_weights_dtype=attn_weights_dtype)
            attn.append(w)
        else:
            x = transformer_encoder_layer(
                x, p, nhead=nhead, need_weights=False, batch_block=batch_block,
                out_dtype=od)
    if need_weights:
        return x, jnp.stack(attn)
    return x


# ---------------------------------------------------------------------------
# Parameter construction (PyTorch-style layouts; prep to kernel layout happens per call).
# ---------------------------------------------------------------------------
def init_params(key, d_model, nhead, dim_feedforward):
    ks = jax.random.split(key, 8)
    s = 0.02
    return {
        "wqkv": jax.random.normal(ks[0], (3 * d_model, d_model), jnp.float32) * s,
        "bqkv": jax.random.normal(ks[1], (1, 3 * d_model), jnp.float32) * s,
        "wo":   jax.random.normal(ks[2], (d_model, d_model), jnp.float32) * s,
        "bo":   jax.random.normal(ks[3], (1, d_model), jnp.float32) * s,
        "w1":   jax.random.normal(ks[4], (dim_feedforward, d_model), jnp.float32) * s,
        "b1":   jax.random.normal(ks[5], (1, dim_feedforward), jnp.float32) * s,
        "w2":   jax.random.normal(ks[6], (d_model, dim_feedforward), jnp.float32) * s,
        "b2":   jax.random.normal(ks[7], (1, d_model), jnp.float32) * s,
        "ln1w": jnp.ones((1, d_model), jnp.float32),
        "ln1b": jnp.zeros((1, d_model), jnp.float32),
        "ln2w": jnp.ones((1, d_model), jnp.float32),
        "ln2b": jnp.zeros((1, d_model), jnp.float32),
    }


# ---------------------------------------------------------------------------
# Pure-JAX (f32) reference of the same forward, for a loose numerical check.
# ---------------------------------------------------------------------------
def _reference_encoder(src, layer_params, *, nhead, eps=1e-5):
    x = jnp.swapaxes(src, 0, 1)
    N, S, E = x.shape
    hd = E // nhead
    attn_all = []
    for p in layer_params:
        wqkv = p["wqkv"]
        bqkv = p["bqkv"].reshape(-1)
        q = x @ wqkv[:E].T + bqkv[:E]
        k = x @ wqkv[E:2 * E].T + bqkv[E:2 * E]
        v = x @ wqkv[2 * E:].T + bqkv[2 * E:]

        def heads(t):
            return t.reshape(N, S, nhead, hd).transpose(0, 2, 1, 3)

        qh, kh, vh = heads(q), heads(k), heads(v)
        s = jnp.einsum('bhqd,bhkd->bhqk', qh, kh) / (hd ** 0.5)
        w = jax.nn.softmax(s, axis=-1)
        attn_all.append(w)
        ctx = jnp.einsum('bhqk,bhkd->bhqd', w, vh).transpose(0, 2, 1, 3).reshape(N, S, E)
        a = ctx @ p["wo"].T + p["bo"].reshape(-1)
        h1 = x + a
        h1 = (h1 - h1.mean(-1, keepdims=True)) * jax.lax.rsqrt(h1.var(-1, keepdims=True) + eps)
        h1 = h1 * p["ln1w"].reshape(-1) + p["ln1b"].reshape(-1)
        ff = jnp.maximum(h1 @ p["w1"].T + p["b1"].reshape(-1), 0.0)
        ff = ff @ p["w2"].T + p["b2"].reshape(-1)
        h2 = h1 + ff
        h2 = (h2 - h2.mean(-1, keepdims=True)) * jax.lax.rsqrt(h2.var(-1, keepdims=True) + eps)
        x = h2 * p["ln2w"].reshape(-1) + p["ln2b"].reshape(-1)
    return x, jnp.stack(attn_all)


if __name__ == "__main__":
    S, N, E = 8, 2, 32          # (seq_len, batch, d_model)
    NHEAD = 4
    DIM_FF = 64
    NUM_LAYERS = 2

    key = jax.random.PRNGKey(0)
    keys = jax.random.split(key, NUM_LAYERS + 1)
    src = jax.random.normal(keys[0], (S, N, E), jnp.float32)
    layer_params = [init_params(k, E, NHEAD, DIM_FF) for k in keys[1:]]

    run = jax.jit(functools.partial(transformer_encoder, nhead=NHEAD))
    out, attn_w = run(src, layer_params)
    jax.block_until_ready((out, attn_w))

    assert out.shape == (N, S, E), out.shape
    assert attn_w.shape == (NUM_LAYERS, N, NHEAD, S, S), attn_w.shape
    assert bool(jnp.all(jnp.isfinite(out)))

    ref_out, ref_attn = _reference_encoder(src, layer_params, nhead=NHEAD)
    out_f32 = out.astype(jnp.float32)
    attn_f32 = attn_w.astype(jnp.float32)
    # bf16 matmuls / bf16 inter-layer activations -> loose tolerance vs f32 reference
    assert bool(jnp.allclose(out_f32, ref_out, atol=1e-1, rtol=1e-1))
    assert bool(jnp.allclose(attn_f32, ref_attn, atol=3e-2))
    # exact softmax normalization: rows sum to 1 (up to bf16 storage rounding)
    assert bool(jnp.allclose(jnp.sum(attn_f32, axis=-1), 1.0, atol=2e-2))
    print("KERNEL_OK")
</pallas_src>

<mosaic_0001>
module attributes {stable_mosaic.version = 11 : i64} {
  func.func @encoder_layer_kernel(%arg0: i32, %arg1: memref<1x8x32xf32, #tpu.memory_space<vmem>>, %arg2: memref<32x96xbf16, #tpu.memory_space<vmem>>, %arg3: memref<1x96xf32, #tpu.memory_space<vmem>>, %arg4: memref<32x32xbf16, #tpu.memory_space<vmem>>, %arg5: memref<1x32xf32, #tpu.memory_space<vmem>>, %arg6: memref<32x64xbf16, #tpu.memory_space<vmem>>, %arg7: memref<1x64xf32, #tpu.memory_space<vmem>>, %arg8: memref<64x32xbf16, #tpu.memory_space<vmem>>, %arg9: memref<1x32xf32, #tpu.memory_space<vmem>>, %arg10: memref<1x32xf32, #tpu.memory_space<vmem>>, %arg11: memref<1x32xf32, #tpu.memory_space<vmem>>, %arg12: memref<1x32xf32, #tpu.memory_space<vmem>>, %arg13: memref<1x32xf32, #tpu.memory_space<vmem>>, %arg14: memref<1x8x32xbf16, #tpu.memory_space<vmem>>, %arg15: memref<1x4x8x8xbf16, #tpu.memory_space<vmem>>) attributes {dimension_semantics = [#tpu.dimension_semantics<parallel>], iteration_bounds = array<i64: 2>, scalar_prefetch = 0 : i64, scratch_operands = 0 : i64, tpu.core_type = #tpu.core_type<tc>, window_params = [{transform_indices = @transform_0, window_bounds = array<i64: 1, 8, 32>}, {pipeline_mode = #tpu.pipeline_mode<synchronous>, transform_indices = @transform_1, window_bounds = array<i64: 32, 96>}, {pipeline_mode = #tpu.pipeline_mode<synchronous>, transform_indices = @transform_2, window_bounds = array<i64: 1, 96>}, {pipeline_mode = #tpu.pipeline_mode<synchronous>, transform_indices = @transform_3, window_bounds = array<i64: 32, 32>}, {pipeline_mode = #tpu.pipeline_mode<synchronous>, transform_indices = @transform_4, window_bounds = array<i64: 1, 32>}, {pipeline_mode = #tpu.pipeline_mode<synchronous>, transform_indices = @transform_5, window_bounds = array<i64: 32, 64>}, {pipeline_mode = #tpu.pipeline_mode<synchronous>, transform_indices = @transform_6, window_bounds = array<i64: 1, 64>}, {pipeline_mode = #tpu.pipeline_mode<synchronous>, transform_indices = @transform_7, window_bounds = array<i64: 64, 32>}, {pipeline_mode = #tpu.pipeline_mode<synchronous>, transform_indices = @transform_8, window_bounds = array<i64: 1, 32>}, {pipeline_mode = #tpu.pipeline_mode<synchronous>, transform_indices = @transform_9, window_bounds = array<i64: 1, 32>}, {pipeline_mode = #tpu.pipeline_mode<synchronous>, transform_indices = @transform_10, window_bounds = array<i64: 1, 32>}, {pipeline_mode = #tpu.pipeline_mode<synchronous>, transform_indices = @transform_11, window_bounds = array<i64: 1, 32>}, {pipeline_mode = #tpu.pipeline_mode<synchronous>, transform_indices = @transform_12, window_bounds = array<i64: 1, 32>}, {transform_indices = @transform_13, window_bounds = array<i64: 1, 8, 32>}, {transform_indices = @transform_14, window_bounds = array<i64: 1, 4, 8, 8>}]} {
    %c0 = arith.constant 0 : index
    %c0_0 = arith.constant 0 : index
    %c0_1 = arith.constant 0 : index
    %0 = vector.load %arg1[%c0, %c0_0, %c0_1] : memref<1x8x32xf32, #tpu.memory_space<vmem>>, vector<1x8x32xf32>
    %1 = vector.shape_cast %0 : vector<1x8x32xf32> to vector<8x32xf32>
    %2 = arith.truncf %1 : vector<8x32xf32> to vector<8x32xbf16>
    %c0_2 = arith.constant 0 : index
    %c0_3 = arith.constant 0 : index
    %3 = vector.load %arg2[%c0_2, %c0_3] : memref<32x96xbf16, #tpu.memory_space<vmem>>, vector<32x96xbf16>
    %cst = arith.constant dense<0.000000e+00> : vector<8x96xf32>
    %4 = tpu.matmul %2, %3, %cst {dimension_numbers = #tpu.dot_dimension_numbers<[1], [0], [0], [1], [0, 0, 1, 1], [], []>} : vector<8x32xbf16>, vector<32x96xbf16>, vector<8x96xf32> -> vector<8x96xf32>
    %c0_4 = arith.constant 0 : index
    %c0_5 = arith.constant 0 : index
    %5 = vector.load %arg3[%c0_4, %c0_5] : memref<1x96xf32, #tpu.memory_space<vmem>>, vector<1x96xf32>
    %6 = vector.broadcast %5 : vector<1x96xf32> to vector<8x96xf32>
    %7 = arith.addf %4, %6 : vector<8x96xf32>
    %8 = vector.shape_cast %7 : vector<8x96xf32> to vector<1x8x96xf32>
    %9 = arith.truncf %8 : vector<1x8x96xf32> to vector<1x8x96xbf16>
    %10 = vector.extract_strided_slice %9 {offsets = [0, 0, 0], sizes = [1, 8, 8], strides = [1, 1, 1]} : vector<1x8x96xbf16> to vector<1x8x8xbf16>
    %11 = vector.extract_strided_slice %9 {offsets = [0, 0, 32], sizes = [1, 8, 8], strides = [1, 1, 1]} : vector<1x8x96xbf16> to vector<1x8x8xbf16>
    %12 = vector.extract_strided_slice %9 {offsets = [0, 0, 64], sizes = [1, 8, 8], strides = [1, 1, 1]} : vector<1x8x96xbf16> to vector<1x8x8xbf16>
    "tpu.trace_start"() <{level = 10 : i32, message = "bqd,bkd->bqk"}> : () -> ()
    %cst_6 = arith.constant dense<0.000000e+00> : vector<1x8x8xf32>
    %13 = tpu.matmul %10, %11, %cst_6 {dimension_numbers = #tpu.dot_dimension_numbers<[2], [2], [1], [1], [0, 0, 0, 1, 1, 1], [0], [0]>} : vector<1x8x8xbf16>, vector<1x8x8xbf16>, vector<1x8x8xf32> -> vector<1x8x8xf32>
    "tpu.trace_stop"() : () -> ()
    %cst_7 = arith.constant dense<0xFF800000> : vector<1x8xf32>
    %14 = vector.multi_reduction <maximumf>, %13, %cst_7 [2] : vector<1x8x8xf32> to vector<1x8xf32>
    %15 = vector.shape_cast %14 : vector<1x8xf32> to vector<1x8x1xf32>
    %16 = vector.broadcast %15 : vector<1x8x1xf32> to vector<1x8x8xf32>
    %17 = arith.subf %13, %16 : vector<1x8x8xf32>
    %18 = math.exp %17 : vector<1x8x8xf32>
    %cst_8 = arith.constant dense<0.000000e+00> : vector<1x8xf32>
    %19 = vector.multi_reduction <add>, %18, %cst_8 [2] : vector<1x8x8xf32> to vector<1x8xf32>
    %20 = vector.shape_cast %19 : vector<1x8xf32> to vector<1x8x1xf32>
    %cst_9 = arith.constant 1.000000e+00 : f32
    %21 = vector.broadcast %cst_9 : f32 to vector<1x8x1xf32>
    %22 = arith.divf %21, %20 : vector<1x8x1xf32>
    %23 = vector.broadcast %22 : vector<1x8x1xf32> to vector<1x8x8xf32>
    %24 = arith.mulf %18, %23 : vector<1x8x8xf32>
    %25 = arith.truncf %24 : vector<1x8x8xf32> to vector<1x8x8xbf16>
    "tpu.trace_start"() <{level = 10 : i32, message = "bqk,bkd->bqd"}> : () -> ()
    %cst_10 = arith.constant dense<0.000000e+00> : vector<1x8x8xf32>
    %26 = tpu.matmul %25, %12, %cst_10 {dimension_numbers = #tpu.dot_dimension_numbers<[2], [1], [1], [2], [0, 0, 0, 1, 1, 2], [0], [0]>} : vector<1x8x8xbf16>, vector<1x8x8xbf16>, vector<1x8x8xf32> -> vector<1x8x8xf32>
    "tpu.trace_stop"() : () -> ()
    %27 = vector.extract_strided_slice %9 {offsets = [0, 0, 8], sizes = [1, 8, 8], strides = [1, 1, 1]} : vector<1x8x96xbf16> to vector<1x8x8xbf16>
    %28 = vector.extract_strided_slice %9 {offsets = [0, 0, 40], sizes = [1, 8, 8], strides = [1, 1, 1]} : vector<1x8x96xbf16> to vector<1x8x8xbf16>
    %29 = vector.extract_strided_slice %9 {offsets = [0, 0, 72], sizes = [1, 8, 8], strides = [1, 1, 1]} : vector<1x8x96xbf16> to vector<1x8x8xbf16>
    "tpu.trace_start"() <{level = 10 : i32, message = "bqd,bkd->bqk"}> : () -> ()
    %cst_11 = arith.constant dense<0.000000e+00> : vector<1x8x8xf32>
    %30 = tpu.matmul %27, %28, %cst_11 {dimension_numbers = #tpu.dot_dimension_numbers<[2], [2], [1], [1], [0, 0, 0, 1, 1, 1], [0], [0]>} : vector<1x8x8xbf16>, vector<1x8x8xbf16>, vector<1x8x8xf32> -> vector<1x8x8xf32>
    "tpu.trace_stop"() : () -> ()
    %cst_12 = arith.constant dense<0xFF800000> : vector<1x8xf32>
    %31 = vector.multi_reduction <maximumf>, %30, %cst_12 [2] : vector<1x8x8xf32> to vector<1x8xf32>
    %32 = vector.shape_cast %31 : vector<1x8xf32> to vector<1x8x1xf32>
    %33 = vector.broadcast %32 : vector<1x8x1xf32> to vector<1x8x8xf32>
    %34 = arith.subf %30, %33 : vector<1x8x8xf32>
    %35 = math.exp %34 : vector<1x8x8xf32>
    %cst_13 = arith.constant dense<0.000000e+00> : vector<1x8xf32>
    %36 = vector.multi_reduction <add>, %35, %cst_13 [2] : vector<1x8x8xf32> to vector<1x8xf32>
    %37 = vector.shape_cast %36 : vector<1x8xf32> to vector<1x8x1xf32>
    %cst_14 = arith.constant 1.000000e+00 : f32
    %38 = vector.broadcast %cst_14 : f32 to vector<1x8x1xf32>
    %39 = arith.divf %38, %37 : vector<1x8x1xf32>
    %40 = vector.broadcast %39 : vector<1x8x1xf32> to vector<1x8x8xf32>
    %41 = arith.mulf %35, %40 : vector<1x8x8xf32>
    %42 = arith.truncf %41 : vector<1x8x8xf32> to vector<1x8x8xbf16>
    "tpu.trace_start"() <{level = 10 : i32, message = "bqk,bkd->bqd"}> : () -> ()
    %cst_15 = arith.constant dense<0.000000e+00> : vector<1x8x8xf32>
    %43 = tpu.matmul %42, %29, %cst_15 {dimension_numbers = #tpu.dot_dimension_numbers<[2], [1], [1], [2], [0, 0, 0, 1, 1, 2], [0], [0]>} : vector<1x8x8xbf16>, vector<1x8x8xbf16>, vector<1x8x8xf32> -> vector<1x8x8xf32>
    "tpu.trace_stop"() : () -> ()
    %44 = vector.extract_strided_slice %9 {offsets = [0, 0, 16], sizes = [1, 8, 8], strides = [1, 1, 1]} : vector<1x8x96xbf16> to vector<1x8x8xbf16>
    %45 = vector.extract_strided_slice %9 {offsets = [0, 0, 48], sizes = [1, 8, 8], strides = [1, 1, 1]} : vector<1x8x96xbf16> to vector<1x8x8xbf16>
    %46 = vector.extract_strided_slice %9 {offsets = [0, 0, 80], sizes = [1, 8, 8], strides = [1, 1, 1]} : vector<1x8x96xbf16> to vector<1x8x8xbf16>
    "tpu.trace_start"() <{level = 10 : i32, message = "bqd,bkd->bqk"}> : () -> ()
    %cst_16 = arith.constant dense<0.000000e+00> : vector<1x8x8xf32>
    %47 = tpu.matmul %44, %45, %cst_16 {dimension_numbers = #tpu.dot_dimension_numbers<[2], [2], [1], [1], [0, 0, 0, 1, 1, 1], [0], [0]>} : vector<1x8x8xbf16>, vector<1x8x8xbf16>, vector<1x8x8xf32> -> vector<1x8x8xf32>
    "tpu.trace_stop"() : () -> ()
    %cst_17 = arith.constant dense<0xFF800000> : vector<1x8xf32>
    %48 = vector.multi_reduction <maximumf>, %47, %cst_17 [2] : vector<1x8x8xf32> to vector<1x8xf32>
    %49 = vector.shape_cast %48 : vector<1x8xf32> to vector<1x8x1xf32>
    %50 = vector.broadcast %49 : vector<1x8x1xf32> to vector<1x8x8xf32>
    %51 = arith.subf %47, %50 : vector<1x8x8xf32>
    %52 = math.exp %51 : vector<1x8x8xf32>
    %cst_18 = arith.constant dense<0.000000e+00> : vector<1x8xf32>
    %53 = vector.multi_reduction <add>, %52, %cst_18 [2] : vector<1x8x8xf32> to vector<1x8xf32>
    %54 = vector.shape_cast %53 : vector<1x8xf32> to vector<1x8x1xf32>
    %cst_19 = arith.constant 1.000000e+00 : f32
    %55 = vector.broadcast %cst_19 : f32 to vector<1x8x1xf32>
    %56 = arith.divf %55, %54 : vector<1x8x1xf32>
    %57 = vector.broadcast %56 : vector<1x8x1xf32> to vector<1x8x8xf32>
    %58 = arith.mulf %52, %57 : vector<1x8x8xf32>
    %59 = arith.truncf %58 : vector<1x8x8xf32> to vector<1x8x8xbf16>
    "tpu.trace_start"() <{level = 10 : i32, message = "bqk,bkd->bqd"}> : () -> ()
    %cst_20 = arith.constant dense<0.000000e+00> : vector<1x8x8xf32>
    %60 = tpu.matmul %59, %46, %cst_20 {dimension_numbers = #tpu.dot_dimension_numbers<[2], [1], [1], [2], [0, 0, 0, 1, 1, 2], [0], [0]>} : vector<1x8x8xbf16>, vector<1x8x8xbf16>, vector<1x8x8xf32> -> vector<1x8x8xf32>
    "tpu.trace_stop"() : () -> ()
    %61 = vector.extract_strided_slice %9 {offsets = [0, 0, 24], sizes = [1, 8, 8], strides = [1, 1, 1]} : vector<1x8x96xbf16> to vector<1x8x8xbf16>
    %62 = vector.extract_strided_slice %9 {offsets = [0, 0, 56], sizes = [1, 8, 8], strides = [1, 1, 1]} : vector<1x8x96xbf16> to vector<1x8x8xbf16>
    %63 = vector.extract_strided_slice %9 {offsets = [0, 0, 88], sizes = [1, 8, 8], strides = [1, 1, 1]} : vector<1x8x96xbf16> to vector<1x8x8xbf16>
    "tpu.trace_start"() <{level = 10 : i32, message = "bqd,bkd->bqk"}> : () -> ()
    %cst_21 = arith.constant dense<0.000000e+00> : vector<1x8x8xf32>
    %64 = tpu.matmul %61, %62, %cst_21 {dimension_numbers = #tpu.dot_dimension_numbers<[2], [2], [1], [1], [0, 0, 0, 1, 1, 1], [0], [0]>} : vector<1x8x8xbf16>, vector<1x8x8xbf16>, vector<1x8x8xf32> -> vector<1x8x8xf32>
    "tpu.trace_stop"() : () -> ()
    %cst_22 = arith.constant dense<0xFF800000> : vector<1x8xf32>
    %65 = vector.multi_reduction <maximumf>, %64, %cst_22 [2] : vector<1x8x8xf32> to vector<1x8xf32>
    %66 = vector.shape_cast %65 : vector<1x8xf32> to vector<1x8x1xf32>
    %67 = vector.broadcast %66 : vector<1x8x1xf32> to vector<1x8x8xf32>
    %68 = arith.subf %64, %67 : vector<1x8x8xf32>
    %69 = math.exp %68 : vector<1x8x8xf32>
    %cst_23 = arith.constant dense<0.000000e+00> : vector<1x8xf32>
    %70 = vector.multi_reduction <add>, %69, %cst_23 [2] : vector<1x8x8xf32> to vector<1x8xf32>
    %71 = vector.shape_cast %70 : vector<1x8xf32> to vector<1x8x1xf32>
    %cst_24 = arith.constant 1.000000e+00 : f32
    %72 = vector.broadcast %cst_24 : f32 to vector<1x8x1xf32>
    %73 = arith.divf %72, %71 : vector<1x8x1xf32>
    %74 = vector.broadcast %73 : vector<1x8x1xf32> to vector<1x8x8xf32>
    %75 = arith.mulf %69, %74 : vector<1x8x8xf32>
    %76 = arith.truncf %75 : vector<1x8x8xf32> to vector<1x8x8xbf16>
    "tpu.trace_start"() <{level = 10 : i32, message = "bqk,bkd->bqd"}> : () -> ()
    %cst_25 = arith.constant dense<0.000000e+00> : vector<1x8x8xf32>
    %77 = tpu.matmul %76, %63, %cst_25 {dimension_numbers = #tpu.dot_dimension_numbers<[2], [1], [1], [2], [0, 0, 0, 1, 1, 2], [0], [0]>} : vector<1x8x8xbf16>, vector<1x8x8xbf16>, vector<1x8x8xf32> -> vector<1x8x8xf32>
    "tpu.trace_stop"() : () -> ()
    %78 = vector.shape_cast %24 : vector<1x8x8xf32> to vector<1x1x8x8xf32>
    %79 = vector.shape_cast %41 : vector<1x8x8xf32> to vector<1x1x8x8xf32>
    %80 = vector.shape_cast %58 : vector<1x8x8xf32> to vector<1x1x8x8xf32>
    %81 = vector.shape_cast %75 : vector<1x8x8xf32> to vector<1x1x8x8xf32>
    %82 = tpu.concatenate %78, %79, %80, %81 in 1 : vector<1x1x8x8xf32>, vector<1x1x8x8xf32>, vector<1x1x8x8xf32>, vector<1x1x8x8xf32> -> vector<1x4x8x8xf32>
    %83 = arith.truncf %82 : vector<1x4x8x8xf32> to vector<1x4x8x8xbf16>
    %c0_26 = arith.constant 0 : index
    %c0_27 = arith.constant 0 : index
    %c0_28 = arith.constant 0 : index
    %c0_29 = arith.constant 0 : index
    %84 = vector.load %arg15[%c0_26, %c0_27, %c0_28, %c0_29] : memref<1x4x8x8xbf16, #tpu.memory_space<vmem>>, vector<1x4x8x8xbf16>
    tpu.vector_store %arg15[%c0_26, %c0_27, %c0_28, %c0_29], %83 {strides = array<i32>} : memref<1x4x8x8xbf16, #tpu.memory_space<vmem>>, vector<1x4x8x8xbf16>,
    %85 = tpu.concatenate %26, %43, %60, %77 in 2 : vector<1x8x8xf32>, vector<1x8x8xf32>, vector<1x8x8xf32>, vector<1x8x8xf32> -> vector<1x8x32xf32>
    %86 = vector.shape_cast %85 : vector<1x8x32xf32> to vector<8x32xf32>
    %87 = arith.truncf %86 : vector<8x32xf32> to vector<8x32xbf16>
    %c0_30 = arith.constant 0 : index
    %c0_31 = arith.constant 0 : index
    %88 = vector.load %arg4[%c0_30, %c0_31] : memref<32x32xbf16, #tpu.memory_space<vmem>>, vector<32x32xbf16>
    %cst_32 = arith.constant dense<0.000000e+00> : vector<8x32xf32>
    %89 = tpu.matmul %87, %88, %cst_32 {dimension_numbers = #tpu.dot_dimension_numbers<[1], [0], [0], [1], [0, 0, 1, 1], [], []>} : vector<8x32xbf16>, vector<32x32xbf16>, vector<8x32xf32> -> vector<8x32xf32>
    %c0_33 = arith.constant 0 : index
    %c0_34 = arith.constant 0 : index
    %90 = vector.load %arg5[%c0_33, %c0_34] : memref<1x32xf32, #tpu.memory_space<vmem>>, vector<1x32xf32>
    %91 = vector.broadcast %90 : vector<1x32xf32> to vector<8x32xf32>
    %92 = arith.addf %89, %91 : vector<8x32xf32>
    %93 = arith.addf %1, %92 : vector<8x32xf32>
    %cst_35 = arith.constant dense<0.000000e+00> : vector<8xf32>
    %94 = vector.multi_reduction <add>, %93, %cst_35 [1] : vector<8x32xf32> to vector<8xf32>
    %95 = vector.shape_cast %94 : vector<8xf32> to vector<8x1xf32>
    %cst_36 = arith.constant 3.200000e+01 : f32
    %96 = vector.broadcast %cst_36 : f32 to vector<8x1xf32>
    %97 = arith.divf %95, %96 : vector<8x1xf32>
    %98 = vector.broadcast %97 : vector<8x1xf32> to vector<8x32xf32>
    %99 = arith.subf %93, %98 : vector<8x32xf32>
    %100 = arith.mulf %99, %99 : vector<8x32xf32>
    %cst_37 = arith.constant dense<0.000000e+00> : vector<8xf32>
    %101 = vector.multi_reduction <add>, %100, %cst_37 [1] : vector<8x32xf32> to vector<8xf32>
    %102 = vector.shape_cast %101 : vector<8xf32> to vector<8x1xf32>
    %cst_38 = arith.constant 3.200000e+01 : f32
    %103 = vector.broadcast %cst_38 : f32 to vector<8x1xf32>
    %104 = arith.divf %102, %103 : vector<8x1xf32>
    %105 = vector.broadcast %97 : vector<8x1xf32> to vector<8x32xf32>
    %106 = arith.subf %93, %105 : vector<8x32xf32>
    %cst_39 = arith.constant 9.99999974E-6 : f32
    %107 = vector.broadcast %cst_39 : f32 to vector<8x1xf32>
    %108 = arith.addf %104, %107 : vector<8x1xf32>
    %109 = math.rsqrt %108 : vector<8x1xf32>
    %110 = vector.broadcast %109 : vector<8x1xf32> to vector<8x32xf32>
    %111 = arith.mulf %106, %110 : vector<8x32xf32>
    %c0_40 = arith.constant 0 : index
    %c0_41 = arith.constant 0 : index
    %112 = vector.load %arg10[%c0_40, %c0_41] : memref<1x32xf32, #tpu.memory_space<vmem>>, vector<1x32xf32>
    %113 = vector.broadcast %112 : vector<1x32xf32> to vector<8x32xf32>
    %114 = arith.mulf %111, %113 : vector<8x32xf32>
    %c0_42 = arith.constant 0 : index
    %c0_43 = arith.constant 0 : index
    %115 = vector.load %arg11[%c0_42, %c0_43] : memref<1x32xf32, #tpu.memory_space<vmem>>, vector<1x32xf32>
    %116 = vector.broadcast %115 : vector<1x32xf32> to vector<8x32xf32>
    %117 = arith.addf %114, %116 : vector<8x32xf32>
    %118 = arith.truncf %117 : vector<8x32xf32> to vector<8x32xbf16>
    %c0_44 = arith.constant 0 : index
    %c0_45 = arith.constant 0 : index
    %119 = vector.load %arg6[%c0_44, %c0_45] : memref<32x64xbf16, #tpu.memory_space<vmem>>, vector<32x64xbf16>
    %cst_46 = arith.constant dense<0.000000e+00> : vector<8x64xf32>
    %120 = tpu.matmul %118, %119, %cst_46 {dimension_numbers = #tpu.dot_dimension_numbers<[1], [0], [0], [1], [0, 0, 1, 1], [], []>} : vector<8x32xbf16>, vector<32x64xbf16>, vector<8x64xf32> -> vector<8x64xf32>
    %c0_47 = arith.constant 0 : index
    %c0_48 = arith.constant 0 : index
    %121 = vector.load %arg7[%c0_47, %c0_48] : memref<1x64xf32, #tpu.memory_space<vmem>>, vector<1x64xf32>
    %122 = vector.broadcast %121 : vector<1x64xf32> to vector<8x64xf32>
    %123 = arith.addf %120, %122 : vector<8x64xf32>
    %cst_49 = arith.constant 0.000000e+00 : f32
    %124 = vector.broadcast %cst_49 : f32 to vector<8x64xf32>
    %125 = arith.maximumf %123, %124 : vector<8x64xf32>
    %126 = arith.truncf %125 : vector<8x64xf32> to vector<8x64xbf16>
    %c0_50 = arith.constant 0 : index
    %c0_51 = arith.constant 0 : index
    %127 = vector.load %arg8[%c0_50, %c0_51] : memref<64x32xbf16, #tpu.memory_space<vmem>>, vector<64x32xbf16>
    %cst_52 = arith.constant dense<0.000000e+00> : vector<8x32xf32>
    %128 = tpu.matmul %126, %127, %cst_52 {dimension_numbers = #tpu.dot_dimension_numbers<[1], [0], [0], [1], [0, 0, 1, 1], [], []>} : vector<8x64xbf16>, vector<64x32xbf16>, vector<8x32xf32> -> vector<8x32xf32>
    %c0_53 = arith.constant 0 : index
    %c0_54 = arith.constant 0 : index
    %129 = vector.load %arg9[%c0_53, %c0_54] : memref<1x32xf32, #tpu.memory_space<vmem>>, vector<1x32xf32>
    %130 = vector.broadcast %129 : vector<1x32xf32> to vector<8x32xf32>
    %131 = arith.addf %128, %130 : vector<8x32xf32>
    %132 = arith.addf %117, %131 : vector<8x32xf32>
    %cst_55 = arith.constant dense<0.000000e+00> : vector<8xf32>
    %133 = vector.multi_reduction <add>, %132, %cst_55 [1] : vector<8x32xf32> to vector<8xf32>
    %134 = vector.shape_cast %133 : vector<8xf32> to vector<8x1xf32>
    %cst_56 = arith.constant 3.200000e+01 : f32
    %135 = vector.broadcast %cst_56 : f32 to vector<8x1xf32>
    %136 = arith.divf %134, %135 : vector<8x1xf32>
    %137 = vector.broadcast %136 : vector<8x1xf32> to vector<8x32xf32>
    %138 = arith.subf %132, %137 : vector<8x32xf32>
    %139 = arith.mulf %138, %138 : vector<8x32xf32>
    %cst_57 = arith.constant dense<0.000000e+00> : vector<8xf32>
    %140 = vector.multi_reduction <add>, %139, %cst_57 [1] : vector<8x32xf32> to vector<8xf32>
    %141 = vector.shape_cast %140 : vector<8xf32> to vector<8x1xf32>
    %cst_58 = arith.constant 3.200000e+01 : f32
    %142 = vector.broadcast %cst_58 : f32 to vector<8x1xf32>
    %143 = arith.divf %141, %142 : vector<8x1xf32>
    %144 = vector.broadcast %136 : vector<8x1xf32> to vector<8x32xf32>
    %145 = arith.subf %132, %144 : vector<8x32xf32>
    %cst_59 = arith.constant 9.99999974E-6 : f32
    %146 = vector.broadcast %cst_59 : f32 to vector<8x1xf32>
    %147 = arith.addf %143, %146 : vector<8x1xf32>
    %148 = math.rsqrt %147 : vector<8x1xf32>
    %149 = vector.broadcast %148 : vector<8x1xf32> to vector<8x32xf32>
    %150 = arith.mulf %145, %149 : vector<8x32xf32>
    %c0_60 = arith.constant 0 : index
    %c0_61 = arith.constant 0 : index
    %151 = vector.load %arg12[%c0_60, %c0_61] : memref<1x32xf32, #tpu.memory_space<vmem>>, vector<1x32xf32>
    %152 = vector.broadcast %151 : vector<1x32xf32> to vector<8x32xf32>
    %153 = arith.mulf %150, %152 : vector<8x32xf32>
    %c0_62 = arith.constant 0 : index
    %c0_63 = arith.constant 0 : index
    %154 = vector.load %arg13[%c0_62, %c0_63] : memref<1x32xf32, #tpu.memory_space<vmem>>, vector<1x32xf32>
    %155 = vector.broadcast %154 : vector<1x32xf32> to vector<8x32xf32>
    %156 = arith.addf %153, %155 : vector<8x32xf32>
    %157 = vector.shape_cast %156 : vector<8x32xf32> to vector<1x8x32xf32>
    %158 = arith.truncf %157 : vector<1x8x32xf32> to vector<1x8x32xbf16>
    %c0_64 = arith.constant 0 : index
    %c0_65 = arith.constant 0 : index
    %c0_66 = arith.constant 0 : index
    %159 = vector.load %arg14[%c0_64, %c0_65, %c0_66] : memref<1x8x32xbf16, #tpu.memory_space<vmem>>, vector<1x8x32xbf16>
    tpu.vector_store %arg14[%c0_64, %c0_65, %c0_66], %158 {strides = array<i32>} : memref<1x8x32xbf16, #tpu.memory_space<vmem>>, vector<1x8x32xbf16>,
    return
  }
  func.func @transform_0(%arg0: i32) -> (i32, i32, i32) {
    %c0_i32 = arith.constant 0 : i32
    %c0_i32_0 = arith.constant 0 : i32
    %c0_i32_1 = arith.constant 0 : i32
    return %arg0, %c0_i32, %c0_i32_0 : i32, i32, i32
  }
  func.func @transform_1(%arg0: i32) -> (i32, i32) {
    %c0_i32 = arith.constant 0 : i32
    %c0_i32_0 = arith.constant 0 : i32
    %c0_i32_1 = arith.constant 0 : i32
    return %c0_i32, %c0_i32_0 : i32, i32
  }
  func.func @transform_2(%arg0: i32) -> (i32, i32) {
    %c0_i32 = arith.constant 0 : i32
    %c0_i32_0 = arith.constant 0 : i32
    %c0_i32_1 = arith.constant 0 : i32
    return %c0_i32, %c0_i32_0 : i32, i32
  }
  func.func @transform_3(%arg0: i32) -> (i32, i32) {
    %c0_i32 = arith.constant 0 : i32
    %c0_i32_0 = arith.constant 0 : i32
    %c0_i32_1 = arith.constant 0 : i32
    return %c0_i32, %c0_i32_0 : i32, i32
  }
  func.func @transform_4(%arg0: i32) -> (i32, i32) {
    %c0_i32 = arith.constant 0 : i32
    %c0_i32_0 = arith.constant 0 : i32
    %c0_i32_1 = arith.constant 0 : i32
    return %c0_i32, %c0_i32_0 : i32, i32
  }
  func.func @transform_5(%arg0: i32) -> (i32, i32) {
    %c0_i32 = arith.constant 0 : i32
    %c0_i32_0 = arith.constant 0 : i32
    %c0_i32_1 = arith.constant 0 : i32
    return %c0_i32, %c0_i32_0 : i32, i32
  }
  func.func @transform_6(%arg0: i32) -> (i32, i32) {
    %c0_i32 = arith.constant 0 : i32
    %c0_i32_0 = arith.constant 0 : i32
    %c0_i32_1 = arith.constant 0 : i32
    return %c0_i32, %c0_i32_0 : i32, i32
  }
  func.func @transform_7(%arg0: i32) -> (i32, i32) {
    %c0_i32 = arith.constant 0 : i32
    %c0_i32_0 = arith.constant 0 : i32
    %c0_i32_1 = arith.constant 0 : i32
    return %c0_i32, %c0_i32_0 : i32, i32
  }
  func.func @transform_8(%arg0: i32) -> (i32, i32) {
    %c0_i32 = arith.constant 0 : i32
    %c0_i32_0 = arith.constant 0 : i32
    %c0_i32_1 = arith.constant 0 : i32
    return %c0_i32, %c0_i32_0 : i32, i32
  }
  func.func @transform_9(%arg0: i32) -> (i32, i32) {
    %c0_i32 = arith.constant 0 : i32
    %c0_i32_0 = arith.constant 0 : i32
    %c0_i32_1 = arith.constant 0 : i32
    return %c0_i32, %c0_i32_0 : i32, i32
  }
  func.func @transform_10(%arg0: i32) -> (i32, i32) {
    %c0_i32 = arith.constant 0 : i32
    %c0_i32_0 = arith.constant 0 : i32
    %c0_i32_1 = arith.constant 0 : i32
    return %c0_i32, %c0_i32_0 : i32, i32
  }
  func.func @transform_11(%arg0: i32) -> (i32, i32) {
    %c0_i32 = arith.constant 0 : i32
    %c0_i32_0 = arith.constant 0 : i32
    %c0_i32_1 = arith.constant 0 : i32
    return %c0_i32, %c0_i32_0 : i32, i32
  }
  func.func @transform_12(%arg0: i32) -> (i32, i32) {
    %c0_i32 = arith.constant 0 : i32
    %c0_i32_0 = arith.constant 0 : i32
    %c0_i32_1 = arith.constant 0 : i32
    return %c0_i32, %c0_i32_0 : i32, i32
  }
  func.func @transform_13(%arg0: i32) -> (i32, i32, i32) {
    %c0_i32 = arith.constant 0 : i32
    %c0_i32_0 = arith.constant 0 : i32
    %c0_i32_1 = arith.constant 0 : i32
    return %arg0, %c0_i32, %c0_i32_0 : i32, i32, i32
  }
  func.func @transform_14(%arg0: i32) -> (i32, i32, i32, i32) {
    %c0_i32 = arith.constant 0 : i32
    %c0_i32_0 = arith.constant 0 : i32
    %c0_i32_1 = arith.constant 0 : i32
    %c0_i32_2 = arith.constant 0 : i32
    return %arg0, %c0_i32, %c0_i32_0, %c0_i32_1 : i32, i32, i32, i32
  }
}

module attributes {stable_mosaic.version = 11 : i64} {
  func.func @encoder_layer_kernel(%arg0: i32, %arg1: memref<1x8x32xbf16, #tpu.memory_space<vmem>>, %arg2: memref<32x96xbf16, #tpu.memory_space<vmem>>, %arg3: memref<1x96xf32, #tpu.memory_space<vmem>>, %arg4: memref<32x32xbf16, #tpu.memory_space<vmem>>, %arg5: memref<1x32xf32, #tpu.memory_space<vmem>>, %arg6: memref<32x64xbf16, #tpu.memory_space<vmem>>, %arg7: memref<1x64xf32, #tpu.memory_space<vmem>>, %arg8: memref<64x32xbf16, #tpu.memory_space<vmem>>, %arg9: memref<1x32xf32, #tpu.memory_space<vmem>>, %arg10: memref<1x32xf32, #tpu.memory_space<vmem>>, %arg11: memref<1x32xf32, #tpu.memory_space<vmem>>, %arg12: memref<1x32xf32, #tpu.memory_space<vmem>>, %arg13: memref<1x32xf32, #tpu.memory_space<vmem>>, %arg14: memref<1x8x32xf32, #tpu.memory_space<vmem>>, %arg15: memref<1x4x8x8xbf16, #tpu.memory_space<vmem>>) attributes {dimension_semantics = [#tpu.dimension_semantics<parallel>], iteration_bounds = array<i64: 2>, scalar_prefetch = 0 : i64, scratch_operands = 0 : i64, tpu.core_type = #tpu.core_type<tc>, window_params = [{transform_indices = @transform_0, window_bounds = array<i64: 1, 8, 32>}, {pipeline_mode = #tpu.pipeline_mode<synchronous>, transform_indices = @transform_1, window_bounds = array<i64: 32, 96>}, {pipeline_mode = #tpu.pipeline_mode<synchronous>, transform_indices = @transform_2, window_bounds = array<i64: 1, 96>}, {pipeline_mode = #tpu.pipeline_mode<synchronous>, transform_indices = @transform_3, window_bounds = array<i64: 32, 32>}, {pipeline_mode = #tpu.pipeline_mode<synchronous>, transform_indices = @transform_4, window_bounds = array<i64: 1, 32>}, {pipeline_mode = #tpu.pipeline_mode<synchronous>, transform_indices = @transform_5, window_bounds = array<i64: 32, 64>}, {pipeline_mode = #tpu.pipeline_mode<synchronous>, transform_indices = @transform_6, window_bounds = array<i64: 1, 64>}, {pipeline_mode = #tpu.pipeline_mode<synchronous>, transform_indices = @transform_7, window_bounds = array<i64: 64, 32>}, {pipeline_mode = #tpu.pipeline_mode<synchronous>, transform_indices = @transform_8, window_bounds = array<i64: 1, 32>}, {pipeline_mode = #tpu.pipeline_mode<synchronous>, transform_indices = @transform_9, window_bounds = array<i64: 1, 32>}, {pipeline_mode = #tpu.pipeline_mode<synchronous>, transform_indices = @transform_10, window_bounds = array<i64: 1, 32>}, {pipeline_mode = #tpu.pipeline_mode<synchronous>, transform_indices = @transform_11, window_bounds = array<i64: 1, 32>}, {pipeline_mode = #tpu.pipeline_mode<synchronous>, transform_indices = @transform_12, window_bounds = array<i64: 1, 32>}, {transform_indices = @transform_13, window_bounds = array<i64: 1, 8, 32>}, {transform_indices = @transform_14, window_bounds = array<i64: 1, 4, 8, 8>}]} {
    %c0 = arith.constant 0 : index
    %c0_0 = arith.constant 0 : index
    %c0_1 = arith.constant 0 : index
    %0 = vector.load %arg1[%c0, %c0_0, %c0_1] : memref<1x8x32xbf16, #tpu.memory_space<vmem>>, vector<1x8x32xbf16>
    %1 = arith.extf %0 : vector<1x8x32xbf16> to vector<1x8x32xf32>
    %2 = vector.shape_cast %1 : vector<1x8x32xf32> to vector<8x32xf32>
    %3 = arith.truncf %2 : vector<8x32xf32> to vector<8x32xbf16>
    %c0_2 = arith.constant 0 : index
    %c0_3 = arith.constant 0 : index
    %4 = vector.load %arg2[%c0_2, %c0_3] : memref<32x96xbf16, #tpu.memory_space<vmem>>, vector<32x96xbf16>
    %cst = arith.constant dense<0.000000e+00> : vector<8x96xf32>
    %5 = tpu.matmul %3, %4, %cst {dimension_numbers = #tpu.dot_dimension_numbers<[1], [0], [0], [1], [0, 0, 1, 1], [], []>} : vector<8x32xbf16>, vector<32x96xbf16>, vector<8x96xf32> -> vector<8x96xf32>
    %c0_4 = arith.constant 0 : index
    %c0_5 = arith.constant 0 : index
    %6 = vector.load %arg3[%c0_4, %c0_5] : memref<1x96xf32, #tpu.memory_space<vmem>>, vector<1x96xf32>
    %7 = vector.broadcast %6 : vector<1x96xf32> to vector<8x96xf32>
    %8 = arith.addf %5, %7 : vector<8x96xf32>
    %9 = vector.shape_cast %8 : vector<8x96xf32> to vector<1x8x96xf32>
    %10 = arith.truncf %9 : vector<1x8x96xf32> to vector<1x8x96xbf16>
    %11 = vector.extract_strided_slice %10 {offsets = [0, 0, 0], sizes = [1, 8, 8], strides = [1, 1, 1]} : vector<1x8x96xbf16> to vector<1x8x8xbf16>
    %12 = vector.extract_strided_slice %10 {offsets = [0, 0, 32], sizes = [1, 8, 8], strides = [1, 1, 1]} : vector<1x8x96xbf16> to vector<1x8x8xbf16>
    %13 = vector.extract_strided_slice %10 {offsets = [0, 0, 64], sizes = [1, 8, 8], strides = [1, 1, 1]} : vector<1x8x96xbf16> to vector<1x8x8xbf16>
    "tpu.trace_start"() <{level = 10 : i32, message = "bqd,bkd->bqk"}> : () -> ()
    %cst_6 = arith.constant dense<0.000000e+00> : vector<1x8x8xf32>
    %14 = tpu.matmul %11, %12, %cst_6 {dimension_numbers = #tpu.dot_dimension_numbers<[2], [2], [1], [1], [0, 0, 0, 1, 1, 1], [0], [0]>} : vector<1x8x8xbf16>, vector<1x8x8xbf16>, vector<1x8x8xf32> -> vector<1x8x8xf32>
    "tpu.trace_stop"() : () -> ()
    %cst_7 = arith.constant dense<0xFF800000> : vector<1x8xf32>
    %15 = vector.multi_reduction <maximumf>, %14, %cst_7 [2] : vector<1x8x8xf32> to vector<1x8xf32>
    %16 = vector.shape_cast %15 : vector<1x8xf32> to vector<1x8x1xf32>
    %17 = vector.broadcast %16 : vector<1x8x1xf32> to vector<1x8x8xf32>
    %18 = arith.subf %14, %17 : vector<1x8x8xf32>
    %19 = math.exp %18 : vector<1x8x8xf32>
    %cst_8 = arith.constant dense<0.000000e+00> : vector<1x8xf32>
    %20 = vector.multi_reduction <add>, %19, %cst_8 [2] : vector<1x8x8xf32> to vector<1x8xf32>
    %21 = vector.shape_cast %20 : vector<1x8xf32> to vector<1x8x1xf32>
    %cst_9 = arith.constant 1.000000e+00 : f32
    %22 = vector.broadcast %cst_9 : f32 to vector<1x8x1xf32>
    %23 = arith.divf %22, %21 : vector<1x8x1xf32>
    %24 = vector.broadcast %23 : vector<1x8x1xf32> to vector<1x8x8xf32>
    %25 = arith.mulf %19, %24 : vector<1x8x8xf32>
    %26 = arith.truncf %25 : vector<1x8x8xf32> to vector<1x8x8xbf16>
    "tpu.trace_start"() <{level = 10 : i32, message = "bqk,bkd->bqd"}> : () -> ()
    %cst_10 = arith.constant dense<0.000000e+00> : vector<1x8x8xf32>
    %27 = tpu.matmul %26, %13, %cst_10 {dimension_numbers = #tpu.dot_dimension_numbers<[2], [1], [1], [2], [0, 0, 0, 1, 1, 2], [0], [0]>} : vector<1x8x8xbf16>, vector<1x8x8xbf16>, vector<1x8x8xf32> -> vector<1x8x8xf32>
    "tpu.trace_stop"() : () -> ()
    %28 = vector.extract_strided_slice %10 {offsets = [0, 0, 8], sizes = [1, 8, 8], strides = [1, 1, 1]} : vector<1x8x96xbf16> to vector<1x8x8xbf16>
    %29 = vector.extract_strided_slice %10 {offsets = [0, 0, 40], sizes = [1, 8, 8], strides = [1, 1, 1]} : vector<1x8x96xbf16> to vector<1x8x8xbf16>
    %30 = vector.extract_strided_slice %10 {offsets = [0, 0, 72], sizes = [1, 8, 8], strides = [1, 1, 1]} : vector<1x8x96xbf16> to vector<1x8x8xbf16>
    "tpu.trace_start"() <{level = 10 : i32, message = "bqd,bkd->bqk"}> : () -> ()
    %cst_11 = arith.constant dense<0.000000e+00> : vector<1x8x8xf32>
    %31 = tpu.matmul %28, %29, %cst_11 {dimension_numbers = #tpu.dot_dimension_numbers<[2], [2], [1], [1], [0, 0, 0, 1, 1, 1], [0], [0]>} : vector<1x8x8xbf16>, vector<1x8x8xbf16>, vector<1x8x8xf32> -> vector<1x8x8xf32>
    "tpu.trace_stop"() : () -> ()
    %cst_12 = arith.constant dense<0xFF800000> : vector<1x8xf32>
    %32 = vector.multi_reduction <maximumf>, %31, %cst_12 [2] : vector<1x8x8xf32> to vector<1x8xf32>
    %33 = vector.shape_cast %32 : vector<1x8xf32> to vector<1x8x1xf32>
    %34 = vector.broadcast %33 : vector<1x8x1xf32> to vector<1x8x8xf32>
    %35 = arith.subf %31, %34 : vector<1x8x8xf32>
    %36 = math.exp %35 : vector<1x8x8xf32>
    %cst_13 = arith.constant dense<0.000000e+00> : vector<1x8xf32>
    %37 = vector.multi_reduction <add>, %36, %cst_13 [2] : vector<1x8x8xf32> to vector<1x8xf32>
    %38 = vector.shape_cast %37 : vector<1x8xf32> to vector<1x8x1xf32>
    %cst_14 = arith.constant 1.000000e+00 : f32
    %39 = vector.broadcast %cst_14 : f32 to vector<1x8x1xf32>
    %40 = arith.divf %39, %38 : vector<1x8x1xf32>
    %41 = vector.broadcast %40 : vector<1x8x1xf32> to vector<1x8x8xf32>
    %42 = arith.mulf %36, %41 : vector<1x8x8xf32>
    %43 = arith.truncf %42 : vector<1x8x8xf32> to vector<1x8x8xbf16>
    "tpu.trace_start"() <{level = 10 : i32, message = "bqk,bkd->bqd"}> : () -> ()
    %cst_15 = arith.constant dense<0.000000e+00> : vector<1x8x8xf32>
    %44 = tpu.matmul %43, %30, %cst_15 {dimension_numbers = #tpu.dot_dimension_numbers<[2], [1], [1], [2], [0, 0, 0, 1, 1, 2], [0], [0]>} : vector<1x8x8xbf16>, vector<1x8x8xbf16>, vector<1x8x8xf32> -> vector<1x8x8xf32>
    "tpu.trace_stop"() : () -> ()
    %45 = vector.extract_strided_slice %10 {offsets = [0, 0, 16], sizes = [1, 8, 8], strides = [1, 1, 1]} : vector<1x8x96xbf16> to vector<1x8x8xbf16>
    %46 = vector.extract_strided_slice %10 {offsets = [0, 0, 48], sizes = [1, 8, 8], strides = [1, 1, 1]} : vector<1x8x96xbf16> to vector<1x8x8xbf16>
    %47 = vector.extract_strided_slice %10 {offsets = [0, 0, 80], sizes = [1, 8, 8], strides = [1, 1, 1]} : vector<1x8x96xbf16> to vector<1x8x8xbf16>
    "tpu.trace_start"() <{level = 10 : i32, message = "bqd,bkd->bqk"}> : () -> ()
    %cst_16 = arith.constant dense<0.000000e+00> : vector<1x8x8xf32>
    %48 = tpu.matmul %45, %46, %cst_16 {dimension_numbers = #tpu.dot_dimension_numbers<[2], [2], [1], [1], [0, 0, 0, 1, 1, 1], [0], [0]>} : vector<1x8x8xbf16>, vector<1x8x8xbf16>, vector<1x8x8xf32> -> vector<1x8x8xf32>
    "tpu.trace_stop"() : () -> ()
    %cst_17 = arith.constant dense<0xFF800000> : vector<1x8xf32>
    %49 = vector.multi_reduction <maximumf>, %48, %cst_17 [2] : vector<1x8x8xf32> to vector<1x8xf32>
    %50 = vector.shape_cast %49 : vector<1x8xf32> to vector<1x8x1xf32>
    %51 = vector.broadcast %50 : vector<1x8x1xf32> to vector<1x8x8xf32>
    %52 = arith.subf %48, %51 : vector<1x8x8xf32>
    %53 = math.exp %52 : vector<1x8x8xf32>
    %cst_18 = arith.constant dense<0.000000e+00> : vector<1x8xf32>
    %54 = vector.multi_reduction <add>, %53, %cst_18 [2] : vector<1x8x8xf32> to vector<1x8xf32>
    %55 = vector.shape_cast %54 : vector<1x8xf32> to vector<1x8x1xf32>
    %cst_19 = arith.constant 1.000000e+00 : f32
    %56 = vector.broadcast %cst_19 : f32 to vector<1x8x1xf32>
    %57 = arith.divf %56, %55 : vector<1x8x1xf32>
    %58 = vector.broadcast %57 : vector<1x8x1xf32> to vector<1x8x8xf32>
    %59 = arith.mulf %53, %58 : vector<1x8x8xf32>
    %60 = arith.truncf %59 : vector<1x8x8xf32> to vector<1x8x8xbf16>
    "tpu.trace_start"() <{level = 10 : i32, message = "bqk,bkd->bqd"}> : () -> ()
    %cst_20 = arith.constant dense<0.000000e+00> : vector<1x8x8xf32>
    %61 = tpu.matmul %60, %47, %cst_20 {dimension_numbers = #tpu.dot_dimension_numbers<[2], [1], [1], [2], [0, 0, 0, 1, 1, 2], [0], [0]>} : vector<1x8x8xbf16>, vector<1x8x8xbf16>, vector<1x8x8xf32> -> vector<1x8x8xf32>
    "tpu.trace_stop"() : () -> ()
    %62 = vector.extract_strided_slice %10 {offsets = [0, 0, 24], sizes = [1, 8, 8], strides = [1, 1, 1]} : vector<1x8x96xbf16> to vector<1x8x8xbf16>
    %63 = vector.extract_strided_slice %10 {offsets = [0, 0, 56], sizes = [1, 8, 8], strides = [1, 1, 1]} : vector<1x8x96xbf16> to vector<1x8x8xbf16>
    %64 = vector.extract_strided_slice %10 {offsets = [0, 0, 88], sizes = [1, 8, 8], strides = [1, 1, 1]} : vector<1x8x96xbf16> to vector<1x8x8xbf16>
    "tpu.trace_start"() <{level = 10 : i32, message = "bqd,bkd->bqk"}> : () -> ()
    %cst_21 = arith.constant dense<0.000000e+00> : vector<1x8x8xf32>
    %65 = tpu.matmul %62, %63, %cst_21 {dimension_numbers = #tpu.dot_dimension_numbers<[2], [2], [1], [1], [0, 0, 0, 1, 1, 1], [0], [0]>} : vector<1x8x8xbf16>, vector<1x8x8xbf16>, vector<1x8x8xf32> -> vector<1x8x8xf32>
    "tpu.trace_stop"() : () -> ()
    %cst_22 = arith.constant dense<0xFF800000> : vector<1x8xf32>
    %66 = vector.multi_reduction <maximumf>, %65, %cst_22 [2] : vector<1x8x8xf32> to vector<1x8xf32>
    %67 = vector.shape_cast %66 : vector<1x8xf32> to vector<1x8x1xf32>
    %68 = vector.broadcast %67 : vector<1x8x1xf32> to vector<1x8x8xf32>
    %69 = arith.subf %65, %68 : vector<1x8x8xf32>
    %70 = math.exp %69 : vector<1x8x8xf32>
    %cst_23 = arith.constant dense<0.000000e+00> : vector<1x8xf32>
    %71 = vector.multi_reduction <add>, %70, %cst_23 [2] : vector<1x8x8xf32> to vector<1x8xf32>
    %72 = vector.shape_cast %71 : vector<1x8xf32> to vector<1x8x1xf32>
    %cst_24 = arith.constant 1.000000e+00 : f32
    %73 = vector.broadcast %cst_24 : f32 to vector<1x8x1xf32>
    %74 = arith.divf %73, %72 : vector<1x8x1xf32>
    %75 = vector.broadcast %74 : vector<1x8x1xf32> to vector<1x8x8xf32>
    %76 = arith.mulf %70, %75 : vector<1x8x8xf32>
    %77 = arith.truncf %76 : vector<1x8x8xf32> to vector<1x8x8xbf16>
    "tpu.trace_start"() <{level = 10 : i32, message = "bqk,bkd->bqd"}> : () -> ()
    %cst_25 = arith.constant dense<0.000000e+00> : vector<1x8x8xf32>
    %78 = tpu.matmul %77, %64, %cst_25 {dimension_numbers = #tpu.dot_dimension_numbers<[2], [1], [1], [2], [0, 0, 0, 1, 1, 2], [0], [0]>} : vector<1x8x8xbf16>, vector<1x8x8xbf16>, vector<1x8x8xf32> -> vector<1x8x8xf32>
    "tpu.trace_stop"() : () -> ()
    %79 = vector.shape_cast %25 : vector<1x8x8xf32> to vector<1x1x8x8xf32>
    %80 = vector.shape_cast %42 : vector<1x8x8xf32> to vector<1x1x8x8xf32>
    %81 = vector.shape_cast %59 : vector<1x8x8xf32> to vector<1x1x8x8xf32>
    %82 = vector.shape_cast %76 : vector<1x8x8xf32> to vector<1x1x8x8xf32>
    %83 = tpu.concatenate %79, %80, %81, %82 in 1 : vector<1x1x8x8xf32>, vector<1x1x8x8xf32>, vector<1x1x8x8xf32>, vector<1x1x8x8xf32> -> vector<1x4x8x8xf32>
    %84 = arith.truncf %83 : vector<1x4x8x8xf32> to vector<1x4x8x8xbf16>
    %c0_26 = arith.constant 0 : index
    %c0_27 = arith.constant 0 : index
    %c0_28 = arith.constant 0 : index
    %c0_29 = arith.constant 0 : index
    %85 = vector.load %arg15[%c0_26, %c0_27, %c0_28, %c0_29] : memref<1x4x8x8xbf16, #tpu.memory_space<vmem>>, vector<1x4x8x8xbf16>
    tpu.vector_store %arg15[%c0_26, %c0_27, %c0_28, %c0_29], %84 {strides = array<i32>} : memref<1x4x8x8xbf16, #tpu.memory_space<vmem>>, vector<1x4x8x8xbf16>,
    %86 = tpu.concatenate %27, %44, %61, %78 in 2 : vector<1x8x8xf32>, vector<1x8x8xf32>, vector<1x8x8xf32>, vector<1x8x8xf32> -> vector<1x8x32xf32>
    %87 = vector.shape_cast %86 : vector<1x8x32xf32> to vector<8x32xf32>
    %88 = arith.truncf %87 : vector<8x32xf32> to vector<8x32xbf16>
    %c0_30 = arith.constant 0 : index
    %c0_31 = arith.constant 0 : index
    %89 = vector.load %arg4[%c0_30, %c0_31] : memref<32x32xbf16, #tpu.memory_space<vmem>>, vector<32x32xbf16>
    %cst_32 = arith.constant dense<0.000000e+00> : vector<8x32xf32>
    %90 = tpu.matmul %88, %89, %cst_32 {dimension_numbers = #tpu.dot_dimension_numbers<[1], [0], [0], [1], [0, 0, 1, 1], [], []>} : vector<8x32xbf16>, vector<32x32xbf16>, vector<8x32xf32> -> vector<8x32xf32>
    %c0_33 = arith.constant 0 : index
    %c0_34 = arith.constant 0 : index
    %91 = vector.load %arg5[%c0_33, %c0_34] : memref<1x32xf32, #tpu.memory_space<vmem>>, vector<1x32xf32>
    %92 = vector.broadcast %91 : vector<1x32xf32> to vector<8x32xf32>
    %93 = arith.addf %90, %92 : vector<8x32xf32>
    %94 = arith.addf %2, %93 : vector<8x32xf32>
    %cst_35 = arith.constant dense<0.000000e+00> : vector<8xf32>
    %95 = vector.multi_reduction <add>, %94, %cst_35 [1] : vector<8x32xf32> to vector<8xf32>
    %96 = vector.shape_cast %95 : vector<8xf32> to vector<8x1xf32>
    %cst_36 = arith.constant 3.200000e+01 : f32
    %97 = vector.broadcast %cst_36 : f32 to vector<8x1xf32>
    %98 = arith.divf %96, %97 : vector<8x1xf32>
    %99 = vector.broadcast %98 : vector<8x1xf32> to vector<8x32xf32>
    %100 = arith.subf %94, %99 : vector<8x32xf32>
    %101 = arith.mulf %100, %100 : vector<8x32xf32>
    %cst_37 = arith.constant dense<0.000000e+00> : vector<8xf32>
    %102 = vector.multi_reduction <add>, %101, %cst_37 [1] : vector<8x32xf32> to vector<8xf32>
    %103 = vector.shape_cast %102 : vector<8xf32> to vector<8x1xf32>
    %cst_38 = arith.constant 3.200000e+01 : f32
    %104 = vector.broadcast %cst_38 : f32 to vector<8x1xf32>
    %105 = arith.divf %103, %104 : vector<8x1xf32>
    %106 = vector.broadcast %98 : vector<8x1xf32> to vector<8x32xf32>
    %107 = arith.subf %94, %106 : vector<8x32xf32>
    %cst_39 = arith.constant 9.99999974E-6 : f32
    %108 = vector.broadcast %cst_39 : f32 to vector<8x1xf32>
    %109 = arith.addf %105, %108 : vector<8x1xf32>
    %110 = math.rsqrt %109 : vector<8x1xf32>
    %111 = vector.broadcast %110 : vector<8x1xf32> to vector<8x32xf32>
    %112 = arith.mulf %107, %111 : vector<8x32xf32>
    %c0_40 = arith.constant 0 : index
    %c0_41 = arith.constant 0 : index
    %113 = vector.load %arg10[%c0_40, %c0_41] : memref<1x32xf32, #tpu.memory_space<vmem>>, vector<1x32xf32>
    %114 = vector.broadcast %113 : vector<1x32xf32> to vector<8x32xf32>
    %115 = arith.mulf %112, %114 : vector<8x32xf32>
    %c0_42 = arith.constant 0 : index
    %c0_43 = arith.constant 0 : index
    %116 = vector.load %arg11[%c0_42, %c0_43] : memref<1x32xf32, #tpu.memory_space<vmem>>, vector<1x32xf32>
    %117 = vector.broadcast %116 : vector<1x32xf32> to vector<8x32xf32>
    %118 = arith.addf %115, %117 : vector<8x32xf32>
    %119 = arith.truncf %118 : vector<8x32xf32> to vector<8x32xbf16>
    %c0_44 = arith.constant 0 : index
    %c0_45 = arith.constant 0 : index
    %120 = vector.load %arg6[%c0_44, %c0_45] : memref<32x64xbf16, #tpu.memory_space<vmem>>, vector<32x64xbf16>
    %cst_46 = arith.constant dense<0.000000e+00> : vector<8x64xf32>
    %121 = tpu.matmul %119, %120, %cst_46 {dimension_numbers = #tpu.dot_dimension_numbers<[1], [0], [0], [1], [0, 0, 1, 1], [], []>} : vector<8x32xbf16>, vector<32x64xbf16>, vector<8x64xf32> -> vector<8x64xf32>
    %c0_47 = arith.constant 0 : index
    %c0_48 = arith.constant 0 : index
    %122 = vector.load %arg7[%c0_47, %c0_48] : memref<1x64xf32, #tpu.memory_space<vmem>>, vector<1x64xf32>
    %123 = vector.broadcast %122 : vector<1x64xf32> to vector<8x64xf32>
    %124 = arith.addf %121, %123 : vector<8x64xf32>
    %cst_49 = arith.constant 0.000000e+00 : f32
    %125 = vector.broadcast %cst_49 : f32 to vector<8x64xf32>
    %126 = arith.maximumf %124, %125 : vector<8x64xf32>
    %127 = arith.truncf %126 : vector<8x64xf32> to vector<8x64xbf16>
    %c0_50 = arith.constant 0 : index
    %c0_51 = arith.constant 0 : index
    %128 = vector.load %arg8[%c0_50, %c0_51] : memref<64x32xbf16, #tpu.memory_space<vmem>>, vector<64x32xbf16>
    %cst_52 = arith.constant dense<0.000000e+00> : vector<8x32xf32>
    %129 = tpu.matmul %127, %128, %cst_52 {dimension_numbers = #tpu.dot_dimension_numbers<[1], [0], [0], [1], [0, 0, 1, 1], [], []>} : vector<8x64xbf16>, vector<64x32xbf16>, vector<8x32xf32> -> vector<8x32xf32>
    %c0_53 = arith.constant 0 : index
    %c0_54 = arith.constant 0 : index
    %130 = vector.load %arg9[%c0_53, %c0_54] : memref<1x32xf32, #tpu.memory_space<vmem>>, vector<1x32xf32>
    %131 = vector.broadcast %130 : vector<1x32xf32> to vector<8x32xf32>
    %132 = arith.addf %129, %131 : vector<8x32xf32>
    %133 = arith.addf %118, %132 : vector<8x32xf32>
    %cst_55 = arith.constant dense<0.000000e+00> : vector<8xf32>
    %134 = vector.multi_reduction <add>, %133, %cst_55 [1] : vector<8x32xf32> to vector<8xf32>
    %135 = vector.shape_cast %134 : vector<8xf32> to vector<8x1xf32>
    %cst_56 = arith.constant 3.200000e+01 : f32
    %136 = vector.broadcast %cst_56 : f32 to vector<8x1xf32>
    %137 = arith.divf %135, %136 : vector<8x1xf32>
    %138 = vector.broadcast %137 : vector<8x1xf32> to vector<8x32xf32>
    %139 = arith.subf %133, %138 : vector<8x32xf32>
    %140 = arith.mulf %139, %139 : vector<8x32xf32>
    %cst_57 = arith.constant dense<0.000000e+00> : vector<8xf32>
    %141 = vector.multi_reduction <add>, %140, %cst_57 [1] : vector<8x32xf32> to vector<8xf32>
    %142 = vector.shape_cast %141 : vector<8xf32> to vector<8x1xf32>
    %cst_58 = arith.constant 3.200000e+01 : f32
    %143 = vector.broadcast %cst_58 : f32 to vector<8x1xf32>
    %144 = arith.divf %142, %143 : vector<8x1xf32>
    %145 = vector.broadcast %137 : vector<8x1xf32> to vector<8x32xf32>
    %146 = arith.subf %133, %145 : vector<8x32xf32>
    %cst_59 = arith.constant 9.99999974E-6 : f32
    %147 = vector.broadcast %cst_59 : f32 to vector<8x1xf32>
    %148 = arith.addf %144, %147 : vector<8x1xf32>
    %149 = math.rsqrt %148 : vector<8x1xf32>
    %150 = vector.broadcast %149 : vector<8x1xf32> to vector<8x32xf32>
    %151 = arith.mulf %146, %150 : vector<8x32xf32>
    %c0_60 = arith.constant 0 : index
    %c0_61 = arith.constant 0 : index
    %152 = vector.load %arg12[%c0_60, %c0_61] : memref<1x32xf32, #tpu.memory_space<vmem>>, vector<1x32xf32>
    %153 = vector.broadcast %152 : vector<1x32xf32> to vector<8x32xf32>
    %154 = arith.mulf %151, %153 : vector<8x32xf32>
    %c0_62 = arith.constant 0 : index
    %c0_63 = arith.constant 0 : index
    %155 = vector.load %arg13[%c0_62, %c0_63] : memref<1x32xf32, #tpu.memory_space<vmem>>, vector<1x32xf32>
    %156 = vector.broadcast %155 : vector<1x32xf32> to vector<8x32xf32>
    %157 = arith.addf %154, %156 : vector<8x32xf32>
    %158 = vector.shape_cast %157 : vector<8x32xf32> to vector<1x8x32xf32>
    %c0_64 = arith.constant 0 : index
    %c0_65 = arith.constant 0 : index
    %c0_66 = arith.constant 0 : index
    %159 = vector.load %arg14[%c0_64, %c0_65, %c0_66] : memref<1x8x32xf32, #tpu.memory_space<vmem>>, vector<1x8x32xf32>
    tpu.vector_store %arg14[%c0_64, %c0_65, %c0_66], %158 {strides = array<i32>} : memref<1x8x32xf32, #tpu.memory_space<vmem>>, vector<1x8x32xf32>,
    return
  }
  func.func @transform_0(%arg0: i32) -> (i32, i32, i32) {
    %c0_i32 = arith.constant 0 : i32
    %c0_i32_0 = arith.constant 0 : i32
    %c0_i32_1 = arith.constant 0 : i32
    return %arg0, %c0_i32, %c0_i32_0 : i32, i32, i32
  }
  func.func @transform_1(%arg0: i32) -> (i32, i32) {
    %c0_i32 = arith.constant 0 : i32
    %c0_i32_0 = arith.constant 0 : i32
    %c0_i32_1 = arith.constant 0 : i32
    return %c0_i32, %c0_i32_0 : i32, i32
  }
  func.func @transform_2(%arg0: i32) -> (i32, i32) {
    %c0_i32 = arith.constant 0 : i32
    %c0_i32_0 = arith.constant 0 : i32
    %c0_i32_1 = arith.constant 0 : i32
    return %c0_i32, %c0_i32_0 : i32, i32
  }
  func.func @transform_3(%arg0: i32) -> (i32, i32) {
    %c0_i32 = arith.constant 0 : i32
    %c0_i32_0 = arith.constant 0 : i32
    %c0_i32_1 = arith.constant 0 : i32
    return %c0_i32, %c0_i32_0 : i32, i32
  }
  func.func @transform_4(%arg0: i32) -> (i32, i32) {
    %c0_i32 = arith.constant 0 : i32
    %c0_i32_0 = arith.constant 0 : i32
    %c0_i32_1 = arith.constant 0 : i32
    return %c0_i32, %c0_i32_0 : i32, i32
  }
  func.func @transform_5(%arg0: i32) -> (i32, i32) {
    %c0_i32 = arith.constant 0 : i32
    %c0_i32_0 = arith.constant 0 : i32
    %c0_i32_1 = arith.constant 0 : i32
    return %c0_i32, %c0_i32_0 : i32, i32
  }
  func.func @transform_6(%arg0: i32) -> (i32, i32) {
    %c0_i32 = arith.constant 0 : i32
    %c0_i32_0 = arith.constant 0 : i32
    %c0_i32_1 = arith.constant 0 : i32
    return %c0_i32, %c0_i32_0 : i32, i32
  }
  func.func @transform_7(%arg0: i32) -> (i32, i32) {
    %c0_i32 = arith.constant 0 : i32
    %c0_i32_0 = arith.constant 0 : i32
    %c0_i32_1 = arith.constant 0 : i32
    return %c0_i32, %c0_i32_0 : i32, i32
  }
  func.func @transform_8(%arg0: i32) -> (i32, i32) {
    %c0_i32 = arith.constant 0 : i32
    %c0_i32_0 = arith.constant 0 : i32
    %c0_i32_1 = arith.constant 0 : i32
    return %c0_i32, %c0_i32_0 : i32, i32
  }
  func.func @transform_9(%arg0: i32) -> (i32, i32) {
    %c0_i32 = arith.constant 0 : i32
    %c0_i32_0 = arith.constant 0 : i32
    %c0_i32_1 = arith.constant 0 : i32
    return %c0_i32, %c0_i32_0 : i32, i32
  }
  func.func @transform_10(%arg0: i32) -> (i32, i32) {
    %c0_i32 = arith.constant 0 : i32
    %c0_i32_0 = arith.constant 0 : i32
    %c0_i32_1 = arith.constant 0 : i32
    return %c0_i32, %c0_i32_0 : i32, i32
  }
  func.func @transform_11(%arg0: i32) -> (i32, i32) {
    %c0_i32 = arith.constant 0 : i32
    %c0_i32_0 = arith.constant 0 : i32
    %c0_i32_1 = arith.constant 0 : i32
    return %c0_i32, %c0_i32_0 : i32, i32
  }
  func.func @transform_12(%arg0: i32) -> (i32, i32) {
    %c0_i32 = arith.constant 0 : i32
    %c0_i32_0 = arith.constant 0 : i32
    %c0_i32_1 = arith.constant 0 : i32
    return %c0_i32, %c0_i32_0 : i32, i32
  }
  func.func @transform_13(%arg0: i32) -> (i32, i32, i32) {
    %c0_i32 = arith.constant 0 : i32
    %c0_i32_0 = arith.constant 0 : i32
    %c0_i32_1 = arith.constant 0 : i32
    return %arg0, %c0_i32, %c0_i32_0 : i32, i32, i32
  }
  func.func @transform_14(%arg0: i32) -> (i32, i32, i32, i32) {
    %c0_i32 = arith.constant 0 : i32
    %c0_i32_0 = arith.constant 0 : i32
    %c0_i32_1 = arith.constant 0 : i32
    %c0_i32_2 = arith.constant 0 : i32
    return %arg0, %c0_i32, %c0_i32_0, %c0_i32_1 : i32, i32, i32, i32
  }
}

</mosaic_0001>

<bundles_post_ra>
// kernel: transformer_encoder.2
= control target key start
LH: loop header
LB: loop body
LE: loop exit
PB: predicated region body
PF: predicated region fallthrough
CT: control target
= control target key end

     0   :  { %s1692_s29 = smov 0   ;;  %s1874_s0 = inlined_call_operand.vmem [shape: f32[2,8,32], index: 0, kind: input, shape index: {}]   ;;  %s1875_s1 = inlined_call_operand.vmem [shape: bf16[32,96], index: 1, kind: input, shape index: {}]   ;;  %s1876_s2 = inlined_call_operand.vmem [shape: f32[1,96], index: 2, kind: input, shape index: {}]   ;;  %s1877_s3 = inlined_call_operand.vmem [shape: bf16[32,32], index: 3, kind: input, shape index: {}]   ;;  %s1878_s4 = inlined_call_operand.vmem [shape: f32[1,32], index: 4, kind: input, shape index: {}]   ;;  %s1879_s5 = inlined_call_operand.vmem [shape: bf16[32,64], index: 5, kind: input, shape index: {}]   ;;  %s1880_s6 = inlined_call_operand.vmem [shape: f32[1,64], index: 6, kind: input, shape index: {}]   ;;  %s1881_s7 = inlined_call_operand.vmem [shape: bf16[64,32], index: 7, kind: input, shape index: {}]   ;;  %s1882_s8 = inlined_call_operand.vmem [shape: f32[1,32], index: 8, kind: input, shape index: {}]   ;;  %s1883_s9 = inlined_call_operand.vmem [shape: f32[1,32], index: 9, kind: input, shape index: {}]   ;;  %s1884_s10 = inlined_call_operand.vmem [shape: f32[1,32], index: 10, kind: input, shape index: {}]   ;;  %s1885_s11 = inlined_call_operand.vmem [shape: f32[1,32], index: 11, kind: input, shape index: {}]   ;;  %s1886_s12 = inlined_call_operand.vmem [shape: f32[1,32], index: 12, kind: input, shape index: {}]   ;;  %s1887_s13 = inlined_call_operand.vmem [shape: bf16[2,8,32], index: 13, kind: output, shape index: {0}]   ;;  %s1888_s14 = inlined_call_operand.vmem [shape: bf16[2,4,8,8], index: 14, kind: output, shape index: {1}]  }
   0x1 LB: > { %s1383_s30 = sadd.s32 4294967295, %s1599_s29   ;;  %p1387_p0 = scmp.ge.s32.totalorder %s1599_s29, 1  ;;  %s1599_s29 = sphi %s1692_s29, %s25_s29  }
   0x2   : > { %p414_p1 = scmp.lt.s32.totalorder %s1599_s29, 3 }
   0x4   : > { %p415_p2 = pnand %p1387_p0, %p414_p1 }
   0x5   : > { %p463_p3 = scmp.lt.s32.totalorder (!%p415_p2), %s1383_s30, 1  ;;  %s1603_s25 = smov (!%p415_p2), 120  }
   0x6   : > { %418 = sbr.rel (%p415_p2) target bundleno = 2433 (0x981), region = 72  ;;  %s1604_s26 = smov (!%p415_p2), 96  }
   0x7   : > { %s1605_s27 = smov (!%p415_p2), 80   ;;  %s1606_s28 = smov (!%p415_p2), 88  }
   0x8   : > { %s1607_s15 = smov (!%p415_p2), 72   ;;  %s1608_s16 = smov (!%p415_p2), 112  }
   0x9   : > { %s1609_s17 = smov (!%p415_p2), 104   ;;  %s1610_s18 = smov (!%p415_p2), 56  }
   0xa   : > { %s1612_s20 = smov (!%p415_p2), 40   ;;  %s1613_s21 = smov (!%p415_p2), 48  }
   0xb   : > { %v1563_v0 = vld [vmem:[%s1875_s1 + $0x8] sm:$0xff]   ;;  %v1601_v1 = vmov 0.0   ;;  %v1564_v2 = vld [vmem:[%s1875_s1] sm:$0xff]   ;;  %vm1602_vm0 = vmmov 0   ;;  %s1890_s30 = smov (!%p463_p3, %s1383_s30), 1  ;;  %vm502_vm1 = vcmask 261120  }
   0xc   : > { %1455 = vmatprep.subr.bf16.mxu0 %v1601_v1  ;;  %1463 = vmatprep.subr.bf16.mxu1 %v1601_v1  ;;  %s1388_s19 = sshll.u32 %s1890_s30, 3  ;;  %v1392_v5 = vld [vmem:[%s1876_s2] ss:$0 sm:$0xff]  ;;  %vm550_vm2 = vcmask 64512   ;;  %vm992_vm3 = vcmask 60416   ;;  %vm615_vm4 = vcmask 1043456  }
   0xd   : > { %1456 = vmatpush3.bf16.msra.mxu0 %v1563_v0  ;;  %1459 = vmatprep.mubr.msk.bf16.mxu0 %vm1602_vm0, %v1601_v1  ;;  %s466_s22 = scalar_lea.vmem %s1874_s0, %s1388_s19  ;;  %s1611_s19 = smov 64   ;;  %vm1010_vm5 = vcmask 130048   ;;  %vm1012_vm6 = vcmask 195584   ;;  %vm1220_vm7 = vcmask 523264   ;;  %vm1295_vm8 = vcmask 257024  }
   0xe   : > { %1457 = vmatprep.subr.bf16.mxu0 %v1601_v1  ;;  %1465 = vmatprep.mubr.msk.bf16.mxu1 %vm1602_vm0, %v1601_v1  ;;  %v1720_v3 = vld [vmem:[%s466_s22] sm:$0xff]  ;;  %s1424_s22 = sshll.u32 %s1890_s30, 4 }
   0xf   : > { %v478_v4 = vpack.c.bf16 %v1720_v3, %v1720_v3 }
  0x11   : > { %1458 = vmatpush3.bf16.msra.mxu0 %v1564_v2 }
  0x12   : > { %1469 = vmatprep.subr.bf16.mxu0 %v1601_v1 }
  0x14   : > { %1460 = vmatmul.mubr.msk.bf16.vlgmr.msra.gmra.mxu0 %vm502_vm1, %v478_v4 }
  0x15   : > { %1471 = vmatprep.mubr.msk.bf16.mxu0 %vm1602_vm0, %v1601_v1 }
  0xd4   : > { %v540_v6 = vpop.f32.mrf.mxu0 }
  0xd5   : > { %v541_v7 = vadd.f32 %v1392_v5, %v540_v6 }
  0xd6   : > { %v1461_v8 = vpop.f32.mrf.mxu0 }
  0xd7   : > { %v1730_v9 = vpack.c.bf16 %v541_v7, %v541_v7 }
  0xd8   : > { %v543_v10 = vpop.f32.mrf.mxu0 }
  0xd9   : > { %659 = vrot.lane.b32.xlu1 %v1730_v9, %s1603_s25  ;;  %548 = vrot.lane.b32.xlu0 %v1730_v9, %s1604_s26  ;;  %s1776_s25 = scalar_lea.vmem %s1888_s14, %s1424_s22  ;;  %s1614_s26 = smov 8  }
  0xda   : > { %v1462_v11 = vpop.f32.mrf.mxu0 }
  0xdd   : > { %772 = vrot.lane.b32.xlu1 %v1730_v9, %s1605_s27  ;;  %661 = vrot.lane.b32.xlu0 %v1730_v9, %s1606_s28 }
  0xe1   : > { %883 = vrot.lane.b32.xlu1 %v1730_v9, %s1607_s15  ;;  %770 = vrot.lane.b32.xlu0 %v1730_v9, %s1608_s16 }
  0xe5   : > { %881 = vrot.lane.b32.xlu0 %v1730_v9, %s1609_s17  ;;  %s1615_s17 = smov 16  }
 0x14b   : > { %v549_v12 = vpop.permute.xlu0 %548  ;;  %v660_v15 = vpop.permute.xlu1 %659 }
 0x14c   : > { %v555_v13 = vsel %vm550_vm2, %v549_v12, 0 }
 0x14d   : > { %1464 = vmatpush3.bf16.xpose.msra.mxu1 %v555_v13 }
 0x14e   : > { %1475 = vmatprep.subr.bf16.mxu1 %v1601_v1 }
 0x14f   : > { %v662_v14 = vpop.permute.xlu0 %661  ;;  %v773_v17 = vpop.permute.xlu1 %772 }
 0x150   : > { %v667_v16 = vsel %vm550_vm2, %v662_v14, 0  ;;  %v778_v18 = vsel %vm550_vm2, %v773_v17, 0 }
 0x153   : > { %v884_v19 = vpop.permute.xlu1 %883  ;;  %v771_v20 = vpop.permute.xlu0 %770 }
 0x154   : > { %1466 = vmatmul.mubr.msk.bf16.vlgmr.msra.gmra.mxu1 %vm550_vm2, %v1730_v9  ;;  %v889_v21 = vsel %vm550_vm2, %v884_v19, 0 }
 0x155   : > { %1476 = vmatpush3.bf16.xpose.msra.mxu1 %v667_v16  ;;  %1477 = vmatprep.mubr.msk.bf16.mxu1 %vm1602_vm0, %v1601_v1 }
 0x156   : > { %1487 = vmatprep.subr.bf16.mxu1 %v1601_v1 }
 0x157   : > { %v882_v22 = vpop.permute.xlu0 %881 }
 0x15c   : > { %1478 = vmatmul.mubr.msk.bf16.vlgmr.msra.gmra.mxu1 %vm550_vm2, %v660_v15 }
 0x15d   : > { %1488 = vmatpush3.bf16.xpose.msra.mxu1 %v778_v18  ;;  %1489 = vmatprep.mubr.msk.bf16.mxu1 %vm1602_vm0, %v1601_v1 }
 0x15e   : > { %1499 = vmatprep.subr.bf16.mxu1 %v1601_v1 }
 0x164   : > { %1490 = vmatmul.mubr.msk.bf16.vlgmr.msra.gmra.mxu1 %vm550_vm2, %v771_v20 }
 0x165   : > { %1500 = vmatpush3.bf16.xpose.msra.mxu1 %v889_v21  ;;  %1501 = vmatprep.mubr.msk.bf16.mxu1 %vm1602_vm0, %v1601_v1 }
 0x166   : > { %1511 = vmatprep.subr.bf16.mxu1 %v1601_v1 }
 0x16c   : > { %1502 = vmatmul.mubr.msk.bf16.vlgmr.msra.gmra.mxu1 %vm550_vm2, %v882_v22 }
 0x16d   : > { %1515 = vmatprep.mubr.msk.bf16.mxu1 %vm1602_vm0, %v1601_v1 }
 0x214   : > { %v591_v23 = vpop.f32.mrf.mxu1 }
 0x215   : > { %v597_v24 = vsel %vm550_vm2, %v591_v23, -inf }
 0x216   : > { %598 = vmax.xlane.f32.xlu1 %v597_v24  ;;  %v1467_v25 = vpop.f32.mrf.mxu1 }
 0x218   : > { %v594_v26 = vpop.f32.mrf.mxu1 }
 0x21a   : > { %v1468_v27 = vpop.f32.mrf.mxu1 }
 0x21c   : > { %v703_v28 = vpop.f32.mrf.mxu1 }
 0x21d   : > { %v709_v29 = vsel %vm550_vm2, %v703_v28, -inf }
 0x21e   : > { %710 = vmax.xlane.f32.xlu0 %v709_v29  ;;  %v1479_v30 = vpop.f32.mrf.mxu1 }
 0x220   : > { %v706_v31 = vpop.f32.mrf.mxu1 }
 0x222   : > { %v1480_v32 = vpop.f32.mrf.mxu1 }
 0x224   : > { %v814_v33 = vpop.f32.mrf.mxu1 }
 0x225   : > { %v820_v34 = vsel %vm550_vm2, %v814_v33, -inf }
 0x226   : > { %821 = vmax.xlane.f32.xlu0 %v820_v34  ;;  %v1491_v35 = vpop.f32.mrf.mxu1  ;;  %v1566_v34 = vld [vmem:[%s1877_s3] sm:$0xff]  }
 0x228   : > { %v817_v36 = vpop.f32.mrf.mxu1 }
 0x22a   : > { %v1492_v37 = vpop.f32.mrf.mxu1 }
 0x22c   : > { %v925_v38 = vpop.f32.mrf.mxu1 }
 0x22d   : > { %v931_v39 = vsel %vm550_vm2, %v925_v38, -inf }
 0x22e   : > { %932 = vmax.xlane.f32.xlu1 %v931_v39  ;;  %v1503_v40 = vpop.f32.mrf.mxu1 }
 0x230   : > { %v928_v41 = vpop.f32.mrf.mxu1 }
 0x232   : > { %v1504_v42 = vpop.f32.mrf.mxu1 }
 0x29f   : > { %v599_v43 = vpop.xlane.xlu1 %598 }
 0x2a0   : > { %v600_v44 = vsub.f32 %v591_v23, %v599_v43 }
 0x2a2   : > { %v601_v45 = vmul.f32 1.442695, %v600_v44 }
 0x2a4   : > { %1573 = vpow2.f32 %v601_v45 }
 0x2a7   : > { %v711_v46 = vpop.xlane.xlu0 %710 }
 0x2a8   : > { %v712_v47 = vsub.f32 %v703_v28, %v711_v46 }
 0x2aa   : > { %v713_v48 = vmul.f32 1.442695, %v712_v47 }
 0x2ac   : > { %1575 = vpow2.f32 %v713_v48 }
 0x2af   : > { %v822_v49 = vpop.xlane.xlu0 %821 }
 0x2b0   : > { %v823_v50 = vsub.f32 %v814_v33, %v822_v49  ;;  %v1565_v33 = vld [vmem:[%s1877_s3 + $0x8] sm:$0xff]  }
 0x2b1   : > { %v1574_v51 = vpop.eup %1573  ;;  %1512 = vmatpush3.bf16.msra.mxu1 %v1565_v33 }
 0x2b2   : > { %v824_v52 = vmul.f32 1.442695, %v823_v50  ;;  %v603_v53 = vsel %vm550_vm2, %v1574_v51, 0.0  ;;  %1513 = vmatprep.subr.bf16.mxu1 %v1601_v1  ;;  %v1404_v50 = vld [vmem:[%s1878_s4] ss:$0 sm:$0xff] }
 0x2b3   : > { %604 = vadd.xlane.f32.xlu0 %v603_v53 }
 0x2b4   : > { %1577 = vpow2.f32 %v824_v52 }
 0x2b5   : > { %1514 = vmatpush3.bf16.msra.mxu1 %v1566_v34 }
 0x2b6   : > { %1527 = vmatprep.subr.bf16.mxu1 %v1601_v1 }
 0x2b7   : > { %v933_v58 = vpop.xlane.xlu1 %932 }
 0x2b8   : > { %v934_v59 = vsub.f32 %v925_v38, %v933_v58 }
 0x2b9   : > { %v1576_v54 = vpop.eup %1575 }
 0x2ba   : > { %v715_v55 = vsel %vm550_vm2, %v1576_v54, 0.0  ;;  %v935_v60 = vmul.f32 1.442695, %v934_v59 }
 0x2bb   : > { %716 = vadd.xlane.f32.xlu1 %v715_v55 }
 0x2bc   : > { %1579 = vpow2.f32 %v935_v60 }
 0x2c1   : > { %v1578_v56 = vpop.eup %1577 }
 0x2c2   : > { %v826_v57 = vsel %vm550_vm2, %v1578_v56, 0.0 }
 0x2c3   : > { %827 = vadd.xlane.f32.xlu0 %v826_v57 }
 0x2c9   : > { %v1580_v61 = vpop.eup %1579 }
 0x2ca   : > { %v937_v62 = vsel %vm550_vm2, %v1580_v61, 0.0 }
 0x2cc   : > { %722 = vrot.lane.b32.xlu1 %v1730_v9, %s1610_s18  ;;  %s1616_s18 = smov 24  }
 0x2d9   : > { %610 = vrot.lane.b32.xlu0 %v1730_v9, %s1611_s19 }
 0x2dd   : > { %944 = vrot.lane.b32.xlu0 %v1730_v9, %s1612_s20 }
 0x2f0   : > { %938 = vadd.xlane.f32.xlu1 %v937_v62 }
 0x301   : > { %833 = vrot.lane.b32.xlu1 %v1730_v9, %s1613_s21 }
 0x33c   : > { %v605_v63 = vpop.xlane.xlu0 %604 }
 0x33d   : > { %1581 = vrcp.f32 %v605_v63  ;;  %v1567_v63 = vld [vmem:[%s1879_s5 + $0x8] sm:$0xff]  }
 0x344   : > { %v717_v0 = vpop.xlane.xlu1 %716 }
 0x345   : > { %1583 = vrcp.f32 %v717_v0  ;;  %v1569_v0 = vld [vmem:[%s1881_s7 + $0x18] sm:$0xff]  }
 0x348   : > { %v723_v10 = vpop.permute.xlu1 %722 }
 0x349   : > { %v728_v12 = vsel %vm615_vm4, %v723_v10, 0  ;;  %v1409_v10 = vld [vmem:[%s1884_s10] ss:$0 sm:$0xff] }
 0x34a   : > { %v1582_v2 = vpop.eup %1581 }
 0x34b   : > { %v608_v4 = vmul.f32 %v1582_v2, %v1574_v51  ;;  %v1570_v2 = vld [vmem:[%s1881_s7 + $0x10] sm:$0xff]  }
 0x34c   : > { %v828_v5 = vpop.xlane.xlu0 %827 }
 0x34d   : > { %1585 = vrcp.f32 %v828_v5  ;;  %v609_v6 = vpack.c.bf16 %v608_v4, %v608_v4 }
 0x34f   : > { %993 = vst.msk [vmem:[%s1776_s25] sm:$0xf] %vm992_vm3, %v609_v6 }
 0x350   : > { %v611_v7 = vpop.permute.xlu0 %610 }
 0x351   : > { %v617_v8 = vsel %vm615_vm4, %v611_v7, 0 }
 0x352   : > { %v1584_v9 = vpop.eup %1583  ;;  %1470 = vmatpush3.bf16.msra.mxu0 %v617_v8  ;;  %v1408_v8 = vld [vmem:[%s1883_s9] ss:$0 sm:$0xff] }
 0x353   : > { %1481 = vmatprep.subr.bf16.mxu0 %v1601_v1  ;;  %v720_v11 = vmul.f32 %v1584_v9, %v1576_v54 }
 0x354   : > { %v945_v20 = vpop.permute.xlu0 %944 }
 0x355   : > { %1472 = vmatmul.mubr.msk.bf16.vlgmr.msra.gmra.mxu0 %vm550_vm2, %v609_v6  ;;  %v721_v13 = vpack.c.bf16 %v720_v11, %v720_v11  ;;  %v950_v21 = vsel %vm615_vm4, %v945_v20, 0 }
 0x356   : > { %1482 = vmatpush3.bf16.msra.mxu0 %v728_v12  ;;  %1483 = vmatprep.mubr.msk.bf16.mxu0 %vm1602_vm0, %v1601_v1 }
 0x357   : > { %994 = vst.msk [vmem:[%s1776_s25 + $0x4] sm:$0xf] %vm992_vm3, %v721_v13  ;;  %1493 = vmatprep.subr.bf16.mxu0 %v1601_v1 }
 0x35a   : > { %v1586_v14 = vpop.eup %1585 }
 0x35b   : > { %v831_v15 = vmul.f32 %v1586_v14, %v1578_v56  ;;  %v1571_v14 = vld [vmem:[%s1881_s7 + $0x8] sm:$0xff]  }
 0x35d   : > { %1484 = vmatmul.mubr.msk.bf16.vlgmr.msra.gmra.mxu0 %vm550_vm2, %v721_v13  ;;  %v832_v16 = vpack.c.bf16 %v831_v15, %v831_v15  ;;  %v1572_v15 = vld [vmem:[%s1881_s7] sm:$0xff]  }
 0x35e   : > { %1495 = vmatprep.mubr.msk.bf16.mxu0 %vm1602_vm0, %v1601_v1 }
 0x35f   : > { %995 = vst.msk [vmem:[%s1776_s25 + $0x8] sm:$0xf] %vm992_vm3, %v832_v16 }
 0x379   : > { %v939_v17 = vpop.xlane.xlu1 %938 }
 0x37a   : > { %1587 = vrcp.f32 %v939_v17 }
 0x37d   : > { %v834_v18 = vpop.permute.xlu1 %833 }
 0x37e   : > { %v839_v19 = vsel %vm615_vm4, %v834_v18, 0 }
 0x37f   : > { %1494 = vmatpush3.bf16.msra.mxu0 %v839_v19 }
 0x380   : > { %1505 = vmatprep.subr.bf16.mxu0 %v1601_v1 }
 0x382   : > { %1496 = vmatmul.mubr.msk.bf16.vlgmr.msra.gmra.mxu0 %vm550_vm2, %v832_v16  ;;  %v1410_v16 = vld [vmem:[%s1880_s6] ss:$0 sm:$0xff] }
 0x383   : > { %1506 = vmatpush3.bf16.msra.mxu0 %v950_v21  ;;  %1507 = vmatprep.mubr.msk.bf16.mxu0 %vm1602_vm0, %v1601_v1 }
 0x384   : > { %1519 = vmatprep.subr.bf16.mxu0 %v1601_v1 }
 0x387   : > { %v1588_v22 = vpop.eup %1587 }
 0x388   : > { %v942_v23 = vmul.f32 %v1588_v22, %v1580_v61 }
 0x38a   : > { %v943_v24 = vpack.c.bf16 %v942_v23, %v942_v23 }
 0x38c   : > { %1508 = vmatmul.mubr.msk.bf16.vlgmr.msra.gmra.mxu0 %vm550_vm2, %v943_v24  ;;  %996 = vst.msk [vmem:[%s1776_s25 + $0xc] sm:$0xf] %vm992_vm3, %v943_v24 }
 0x38d   : > { %1523 = vmatprep.mubr.msk.bf16.mxu0 %vm1602_vm0, %v1601_v1  ;;  %1520 = vmatpush3.bf16.msra.mxu0 %v1567_v63 }
 0x38e   : > { %1521 = vmatprep.subr.bf16.mxu0 %v1601_v1 }
 0x415   : > { %v653_v25 = vpop.f32.mrf.mxu0 }
 0x417   : > { %v1473_v26 = vpop.f32.mrf.mxu0 }
 0x419   : > { %v656_v27 = vpop.f32.mrf.mxu0 }
 0x41b   : > { %v1474_v28 = vpop.f32.mrf.mxu0 }
 0x41d   : > { %v764_v29 = vpop.f32.mrf.mxu0 }
 0x41e   : > { %998 = vrot.lane.b32.xlu1 %v764_v29, %s1614_s26 }
 0x41f   : > { %v1485_v30 = vpop.f32.mrf.mxu0 }
 0x421   : > { %v767_v31 = vpop.f32.mrf.mxu0 }
 0x423   : > { %v1486_v32 = vpop.f32.mrf.mxu0 }
 0x442   : > { %v875_v35 = vpop.f32.mrf.mxu0 }
 0x443   : > { %1002 = vrot.lane.b32.xlu0 %v875_v35, %s1615_s17  ;;  %s1389_s17 = sshll.u32 %s1890_s30, 2 }
 0x444   : > { %v1497_v36 = vpop.f32.mrf.mxu0  ;;  %s470_s20 = scalar_lea.vmem %s1887_s13, %s1389_s17 }
 0x446   : > { %v878_v37 = vpop.f32.mrf.mxu0 }
 0x448   : > { %v1498_v38 = vpop.f32.mrf.mxu0 }
 0x44c   : > { %v986_v39 = vpop.f32.mrf.mxu0 }
 0x44d   : > { %1006 = vrot.lane.b32.xlu1 %v986_v39, %s1616_s18 }
 0x44e   : > { %v1509_v40 = vpop.f32.mrf.mxu0 }
 0x44f   : > { %v1420_v40 = vld [vmem:[%s1885_s11] ss:$0 sm:$0xff] }
 0x450   : > { %v989_v41 = vpop.f32.mrf.mxu0 }
 0x452   : > { %v1510_v42 = vpop.f32.mrf.mxu0 }
 0x453   : > { %v1421_v42 = vld [vmem:[%s1886_s12] ss:$0 sm:$0xff] }
 0x490   : > { %v999_v43 = vpop.permute.xlu1 %998 }
 0x491   : > { %v1009_v45 = vsel %vm550_vm2, %v653_v25, %v999_v43 }
 0x4b5   : > { %v1003_v44 = vpop.permute.xlu0 %1002 }
 0x4b6   : > { %v1011_v46 = vsel %vm1010_vm5, %v1009_v45, %v1003_v44 }
 0x4bf   : > { %v1007_v47 = vpop.permute.xlu1 %1006 }
 0x4c0   : > { %v1013_v48 = vsel %vm1012_vm6, %v1011_v46, %v1007_v47 }
 0x4c1   : > { %v1014_v49 = vpack.c.bf16 %v1013_v48, %v1013_v48 }
 0x4c3   : > { %1516 = vmatmul.mubr.msk.bf16.vlgmr.msra.gmra.mxu1 %vm502_vm1, %v1014_v49 }
 0x4c4   : > { %1535 = vmatprep.mubr.msk.bf16.mxu1 %vm1602_vm0, %v1601_v1  ;;  %1528 = vmatpush3.bf16.msra.mxu1 %v1569_v0 }
 0x4c5   : > { %1529 = vmatprep.subr.bf16.mxu1 %v1601_v1 }
 0x4c8   : > { %1530 = vmatpush3.bf16.msra.mxu1 %v1570_v2 }
 0x4c9   : > { %1531 = vmatprep.subr.bf16.mxu1 %v1601_v1 }
 0x4cc   : > { %1532 = vmatpush3.bf16.msra.mxu1 %v1571_v14 }
 0x4cd   : > { %1533 = vmatprep.subr.bf16.mxu1 %v1601_v1  ;;  %v1414_v1 = vld [vmem:[%s1882_s8] ss:$0 sm:$0xff] }
 0x4d0   : > { %1534 = vmatpush3.bf16.msra.mxu1 %v1572_v15 }
 0x583   : > { %v1075_v51 = vpop.f32.mrf.mxu1 }
 0x584   : > { %v1076_v52 = vadd.f32 %v1404_v50, %v1075_v51 }
 0x585   : > { %v1517_v53 = vpop.f32.mrf.mxu1 }
 0x586   : > { %v1081_v54 = vadd.f32 %v1076_v52, %v1720_v3  ;;  %v1568_v3 = vld [vmem:[%s1879_s5] sm:$0xff]  }
 0x587   : > { %v1078_v55 = vpop.f32.mrf.mxu1  ;;  %1522 = vmatpush3.bf16.msra.mxu0 %v1568_v3 }
 0x588   : > { %v1082_v56 = vsel %vm502_vm1, %v1081_v54, 0.0 }
 0x589   : > { %1083 = vadd.xlane.f32.xlu0 %v1082_v56  ;;  %v1518_v57 = vpop.f32.mrf.mxu1 }
 0x612   : > { %v1084_v58 = vpop.xlane.xlu0 %1083 }
 0x613   : > { %v1086_v59 = vmul.f32 0.03125, %v1084_v58 }
 0x615   : > { %v1087_v60 = vsub.f32 %v1081_v54, %v1086_v59 }
 0x617   : > { %v1088_v61 = vmul.f32 %v1087_v60, %v1087_v60 }
 0x619   : > { %v1089_v62 = vsel %vm502_vm1, %v1088_v61, 0.0 }
 0x61a   : > { %1090 = vadd.xlane.f32.xlu1 %v1089_v62 }
 0x6a3   : > { %v1091_v4 = vpop.xlane.xlu1 %1090 }
 0x6a4   : > { %v1092_v5 = vmul.f32 0.03125, %v1091_v4 }
 0x6a6   : > { %v1093_v6 = vadd.f32 1e-05, %v1092_v5 }
 0x6a8   : > { %1589 = vrsqrt.f32 %v1093_v6 }
 0x6b5   : > { %v1590_v7 = vpop.eup %1589 }
 0x6b6   : > { %v1095_v9 = vmul.f32 %v1590_v7, %v1087_v60 }
 0x6b8   : > { %v1103_v11 = vmul.f32 %v1408_v8, %v1095_v9 }
 0x6ba   : > { %v1111_v12 = vadd.f32 %v1409_v10, %v1103_v11 }
 0x6bc   : > { %v1112_v13 = vpack.c.bf16 %v1111_v12, %v1111_v12 }
 0x6be   : > { %1524 = vmatmul.mubr.msk.bf16.vlgmr.msra.gmra.mxu0 %vm502_vm1, %v1112_v13 }
 0x77e   : > { %v1173_v17 = vpop.f32.mrf.mxu0 }
 0x77f   : > { %v1174_v18 = vadd.f32 %v1410_v16, %v1173_v17 }
 0x780   : > { %v1525_v19 = vpop.f32.mrf.mxu0 }
 0x781   : > { %v1179_v20 = vmax.f32 %v1174_v18, 0.0 }
 0x782   : > { %v1176_v21 = vpop.f32.mrf.mxu0 }
 0x783   : > { %v1180_v22 = vpack.c.bf16 %v1179_v20, %v1179_v20 }
 0x784   : > { %v1526_v23 = vpop.f32.mrf.mxu0 }
 0x785   : > { %1536 = vmatmul.mubr.msk.bf16.vlgmr.msra.gmra.mxu1 %vm1220_vm7, %v1180_v22 }
 0x845   : > { %v1258_v24 = vpop.f32.mrf.mxu1 }
 0x846   : > { %v1259_v25 = vadd.f32 %v1414_v1, %v1258_v24 }
 0x847   : > { %v1537_v26 = vpop.f32.mrf.mxu1 }
 0x848   : > { %v1264_v27 = vadd.f32 %v1259_v25, %v1111_v12 }
 0x849   : > { %v1261_v28 = vpop.f32.mrf.mxu1 }
 0x84a   : > { %v1265_v29 = vsel %vm502_vm1, %v1264_v27, 0.0 }
 0x84b   : > { %1266 = vadd.xlane.f32.xlu0 %v1265_v29  ;;  %v1538_v30 = vpop.f32.mrf.mxu1 }
 0x8d4   : > { %v1267_v31 = vpop.xlane.xlu0 %1266 }
 0x8d5   : > { %v1268_v32 = vmul.f32 0.03125, %v1267_v31 }
 0x8d7   : > { %v1269_v33 = vsub.f32 %v1264_v27, %v1268_v32 }
 0x8d9   : > { %v1270_v34 = vmul.f32 %v1269_v33, %v1269_v33 }
 0x8db   : > { %v1271_v35 = vsel %vm502_vm1, %v1270_v34, 0.0 }
 0x8dc   : > { %1272 = vadd.xlane.f32.xlu0 %v1271_v35 }
 0x965   : > { %v1273_v36 = vpop.xlane.xlu0 %1272 }
 0x966   : > { %v1274_v37 = vmul.f32 0.03125, %v1273_v36 }
 0x968   : > { %v1275_v38 = vadd.f32 1e-05, %v1274_v37 }
 0x96a   : > { %1591 = vrsqrt.f32 %v1275_v38 }
 0x977   : > { %v1592_v39 = vpop.eup %1591 }
 0x978   : > { %v1277_v41 = vmul.f32 %v1592_v39, %v1269_v33 }
 0x97a   : > { %v1285_v43 = vmul.f32 %v1420_v40, %v1277_v41 }
 0x97c   : > { %v1293_v44 = vadd.f32 %v1421_v42, %v1285_v43 }
 0x97e   : > { %v1294_v45 = vpack.c.bf16 %v1293_v44, %v1293_v44 }
 0x980   : > { %1296 = vst.msk [vmem:[%s470_s20] sm:$0xf] %vm1295_vm8, %v1294_v45 }
 0x981 PF: > { %s25_s29 = sadd.s32 1, %s1599_s29  }
 0x982   : > { %p22_p4 = scmp.ge.s32.totalorder %s25_s29, 4  }
 0x984   :  { %24 = sbr.rel (!%p22_p4) target bundleno = 1 (0x1), region = 114 }

// kernel: transformer_encoder.3
= control target key start
LH: loop header
LB: loop body
LE: loop exit
PB: predicated region body
PF: predicated region fallthrough
CT: control target
= control target key end

     0   :  { %s2052_s0 = inlined_call_operand.vmem [shape: bf16[2,8,32], index: 0, kind: input, shape index: {}]   ;;  %s2053_s1 = inlined_call_operand.vmem [shape: bf16[32,96], index: 1, kind: input, shape index: {}]   ;;  %s2054_s2 = inlined_call_operand.vmem [shape: f32[1,96], index: 2, kind: input, shape index: {}]   ;;  %s2055_s3 = inlined_call_operand.vmem [shape: bf16[32,32], index: 3, kind: input, shape index: {}]   ;;  %s2056_s4 = inlined_call_operand.vmem [shape: f32[1,32], index: 4, kind: input, shape index: {}]   ;;  %s2057_s5 = inlined_call_operand.vmem [shape: bf16[32,64], index: 5, kind: input, shape index: {}]   ;;  %s2058_s6 = inlined_call_operand.vmem [shape: f32[1,64], index: 6, kind: input, shape index: {}]   ;;  %s2059_s7 = inlined_call_operand.vmem [shape: bf16[64,32], index: 7, kind: input, shape index: {}]   ;;  %s2060_s8 = inlined_call_operand.vmem [shape: f32[1,32], index: 8, kind: input, shape index: {}]   ;;  %s2061_s9 = inlined_call_operand.vmem [shape: f32[1,32], index: 9, kind: input, shape index: {}]   ;;  %s2062_s10 = inlined_call_operand.vmem [shape: f32[1,32], index: 10, kind: input, shape index: {}]   ;;  %s2063_s11 = inlined_call_operand.vmem [shape: f32[1,32], index: 11, kind: input, shape index: {}]   ;;  %s2064_s12 = inlined_call_operand.vmem [shape: f32[1,32], index: 12, kind: input, shape index: {}]   ;;  %s2065_s13 = inlined_call_operand.hbm [shape: f32[2,8,32], index: 13, kind: output, shape index: {0}]   ;;  %s2066_s14 = inlined_call_operand.vmem [shape: bf16[2,4,8,8], index: 14, kind: output, shape index: {1}]  }
   0x1   :  { %2067 = sst [smem:[#allocation5_spill]] %s2052_s0 }
   0x2   :  { %2068 = sst [smem:[#allocation6_spill]] %s2053_s1 }
   0x3   :  { %2069 = sst [smem:[#allocation7_spill]] %s2054_s2 }
   0x4   :  { %2070 = sst [smem:[#allocation8_spill]] %s2055_s3 }
   0x5   :  { %2071 = sst [smem:[#allocation9_spill]] %s2056_s4 }
   0x6   :  { %2072 = sst [smem:[#allocation10_spill]] %s2057_s5 }
   0x7   :  { %20 = vsyncpa [#allocation3], 0 }
   0x8   :  { %22 = vsyncpa [#allocation3 + $0x1], 0  ;;  %s1800_s29 = smov 0   ;;  %s1802_s30 = smov 0  }
   0x9   :  { %s1804_s15 = smov 0   ;;  %s1806_s16 = smov 0  }
   0xa LB: > { %s1821_s17 = sadd.s32 4294967295, %s1706_s16   ;;  %s1402_s18 = sadd.s32 4294967294, %s1706_s16   ;;  %s1706_s16 = sphi %s1806_s16, %s2084_s16   ;;  %s1702_s15 = sphi %s1804_s15, %s2083_s15   ;;  %s1698_s30 = sphi %s1802_s30, %s2082_s30   ;;  %s1694_s29 = sphi %s1800_s29, %s2081_s29  }
   0xb   : > { %s1825_s19 = sadd.s32 1, %s1706_s16   ;;  %s313_s20 = sadd.s32 1, %s1702_s15 }
   0xc   : > { %s310_s21 = ssub.s32 %s1706_s16, %s1825_s19  ;;  %p323_p0 = scmp.ne.s32.totalorder %s1702_s15, %s1698_s30 }
   0xd   : > { %p311_p1 = scmp.eq.s32.totalorder %s310_s21, 0  ;;  %p324_p2 = scmp.eq.s32.totalorder %s1821_s17, 1 }
   0xe   : > { %p329_p3 = scmp.ne.s32.totalorder %s1698_s30, %s1694_s29  ;;  %p330_p4 = scmp.eq.s32.totalorder %s1402_s18, 1 }
   0xf   : > { %s1836_s22 = scalar_select %p311_p1, %s1702_s15, %s313_s20  }
  0x10   : > { %p1838_p5 = por %p324_p2, %p323_p0  ;;  %p1842_p6 = por %p330_p4, %p329_p3 }
  0x11   : > { %p1405_p7 = scmp.ge.s32.totalorder %s1706_s16, 1  ;;  %p417_p8 = scmp.lt.s32.totalorder %s1706_s16, 3 }
  0x13   : > { %p418_p9 = pnand %p1405_p7, %p417_p8 }
  0x14   : > { %s2075_s1 = sld [smem:[#allocation6_spill]] (!%p418_p9)  ;;  %p467_p10 = scmp.lt.s32.totalorder (!%p418_p9), %s1821_s17, 1 }
  0x15   : > { %421 = sbr.rel (%p418_p9) target bundleno = 2458 (0x99a), region = 72  ;;  %s2076_s0 = sld [smem:[#allocation5_spill]] (!%p418_p9) }
  0x16   : > { %s2077_s2 = sld [smem:[#allocation7_spill]] (!%p418_p9)  ;;  %s1711_s21 = smov (!%p418_p9), 96  }
  0x17   : > { %s1712_s25 = smov (!%p418_p9), 80   ;;  %s1714_s27 = smov (!%p418_p9), 72  }
  0x18   : > { %s1715_s28 = smov (!%p418_p9), 112   ;;  %s2078_s3 = sld [smem:[#allocation8_spill]] (!%p418_p9) }
  0x19   : > { %s2079_s4 = sld [smem:[#allocation9_spill]] (!%p418_p9) }
  0x1a   : > { %v1615_v0 = vld [vmem:[%s2075_s1 + $0x8] sm:$0xff]   ;;  %v1708_v1 = vmov 0.0   ;;  %v1616_v2 = vld [vmem:[%s2075_s1] sm:$0xff]   ;;  %vm1709_vm0 = vmmov 0   ;;  %s1863_s18 = scalar_select %p467_p10, %s1821_s17, 1  ;;  %vm503_vm1 = vcmask 261120  }
  0x1b   : > { %1476 = vmatprep.subr.bf16.mxu0 %v1708_v1  ;;  %1484 = vmatprep.subr.bf16.mxu1 %v1708_v1  ;;  %vm551_vm2 = vcmask 64512   ;;  %vm993_vm3 = vcmask 60416   ;;  %vm616_vm4 = vcmask 1043456   ;;  %vm1011_vm5 = vcmask 130048   ;;  %s2080_s5 = sld [smem:[#allocation10_spill]] }
  0x1c   : > { %1477 = vmatpush3.bf16.msra.mxu0 %v1615_v0  ;;  %1480 = vmatprep.mubr.msk.bf16.mxu0 %vm1709_vm0, %v1708_v1  ;;  %s1407_s20 = sshll.u32 %s1863_s18, 2  ;;  %v1411_v5 = vld [vmem:[%s2077_s2] ss:$0 sm:$0xff]  ;;  %vm1013_vm6 = vcmask 195584   ;;  %vm1221_vm7 = vcmask 523264  }
  0x1d   : > { %1478 = vmatprep.subr.bf16.mxu0 %v1708_v1  ;;  %1486 = vmatprep.mubr.msk.bf16.mxu1 %vm1709_vm0, %v1708_v1  ;;  %s470_s26 = scalar_lea.vmem %s2076_s0, %s1407_s20  ;;  %s1710_s20 = smov 120  }
  0x1e   : > { %v1870_v3 = vld [vmem:[%s470_s26] sm:$0xf]  ;;  %s1713_s26 = smov 88   ;;  %s1716_s0 = smov 104  }
  0x1f   : > { %v1410_v4 = vcombine.low %v1870_v3, %v1870_v3 }
  0x20   : > { %1479 = vmatpush3.bf16.msra.mxu0 %v1616_v2 }
  0x21   : > { %1490 = vmatprep.subr.bf16.mxu0 %v1708_v1 }
  0x23   : > { %1481 = vmatmul.mubr.msk.bf16.vlgmr.msra.gmra.mxu0 %vm503_vm1, %v1410_v4 }
  0x24   : > { %1492 = vmatprep.mubr.msk.bf16.mxu0 %vm1709_vm0, %v1708_v1 }
  0xe3   : > { %v541_v6 = vpop.f32.mrf.mxu0 }
  0xe4   : > { %v542_v7 = vadd.f32 %v1411_v5, %v541_v6 }
  0xe5   : > { %v1482_v8 = vpop.f32.mrf.mxu0 }
  0xe6   : > { %v1880_v9 = vpack.c.bf16 %v542_v7, %v542_v7 }
  0xe7   : > { %v544_v10 = vpop.f32.mrf.mxu0 }
  0xe8   : > { %660 = vrot.lane.b32.xlu1 %v1880_v9, %s1710_s20  ;;  %549 = vrot.lane.b32.xlu0 %v1880_v9, %s1711_s21  ;;  %s1718_s20 = smov 64   ;;  %s1719_s21 = smov 40  }
  0xe9   : > { %v1483_v11 = vpop.f32.mrf.mxu0 }
  0xec   : > { %773 = vrot.lane.b32.xlu1 %v1880_v9, %s1712_s25  ;;  %662 = vrot.lane.b32.xlu0 %v1880_v9, %s1713_s26  ;;  %s1720_s25 = smov 48   ;;  %s1445_s26 = sshll.u32 %s1863_s18, 4 }
  0xed   : > { %s1721_s18 = smov 8  }
  0xf0   : > { %884 = vrot.lane.b32.xlu1 %v1880_v9, %s1714_s27  ;;  %771 = vrot.lane.b32.xlu0 %v1880_v9, %s1715_s28  ;;  %s1722_s27 = smov 16   ;;  %s1723_s28 = smov 24  }
  0xf4   : > { %882 = vrot.lane.b32.xlu0 %v1880_v9, %s1716_s0  ;;  %s1717_s0 = smov 56  }
 0x15a   : > { %v550_v12 = vpop.permute.xlu0 %549  ;;  %v661_v15 = vpop.permute.xlu1 %660 }
 0x15b   : > { %v556_v13 = vsel %vm551_vm2, %v550_v12, 0 }
 0x15c   : > { %1485 = vmatpush3.bf16.xpose.msra.mxu1 %v556_v13 }
 0x15d   : > { %1496 = vmatprep.subr.bf16.mxu1 %v1708_v1 }
 0x15e   : > { %v663_v14 = vpop.permute.xlu0 %662  ;;  %v774_v17 = vpop.permute.xlu1 %773 }
 0x15f   : > { %v668_v16 = vsel %vm551_vm2, %v663_v14, 0  ;;  %v779_v18 = vsel %vm551_vm2, %v774_v17, 0 }
 0x162   : > { %v885_v19 = vpop.permute.xlu1 %884  ;;  %v772_v20 = vpop.permute.xlu0 %771 }
 0x163   : > { %1487 = vmatmul.mubr.msk.bf16.vlgmr.msra.gmra.mxu1 %vm551_vm2, %v1880_v9  ;;  %v890_v21 = vsel %vm551_vm2, %v885_v19, 0 }
 0x164   : > { %1497 = vmatpush3.bf16.xpose.msra.mxu1 %v668_v16  ;;  %1498 = vmatprep.mubr.msk.bf16.mxu1 %vm1709_vm0, %v1708_v1 }
 0x165   : > { %1508 = vmatprep.subr.bf16.mxu1 %v1708_v1 }
 0x166   : > { %v883_v22 = vpop.permute.xlu0 %882 }
 0x16b   : > { %1499 = vmatmul.mubr.msk.bf16.vlgmr.msra.gmra.mxu1 %vm551_vm2, %v661_v15 }
 0x16c   : > { %1509 = vmatpush3.bf16.xpose.msra.mxu1 %v779_v18  ;;  %1510 = vmatprep.mubr.msk.bf16.mxu1 %vm1709_vm0, %v1708_v1 }
 0x16d   : > { %1520 = vmatprep.subr.bf16.mxu1 %v1708_v1 }
 0x173   : > { %1511 = vmatmul.mubr.msk.bf16.vlgmr.msra.gmra.mxu1 %vm551_vm2, %v772_v20 }
 0x174   : > { %1521 = vmatpush3.bf16.xpose.msra.mxu1 %v890_v21  ;;  %1522 = vmatprep.mubr.msk.bf16.mxu1 %vm1709_vm0, %v1708_v1 }
 0x175   : > { %1532 = vmatprep.subr.bf16.mxu1 %v1708_v1 }
 0x17b   : > { %1523 = vmatmul.mubr.msk.bf16.vlgmr.msra.gmra.mxu1 %vm551_vm2, %v883_v22 }
 0x17c   : > { %1536 = vmatprep.mubr.msk.bf16.mxu1 %vm1709_vm0, %v1708_v1 }
 0x223   : > { %v592_v23 = vpop.f32.mrf.mxu1 }
 0x224   : > { %v598_v24 = vsel %vm551_vm2, %v592_v23, -inf }
 0x225   : > { %599 = vmax.xlane.f32.xlu1 %v598_v24  ;;  %v1488_v25 = vpop.f32.mrf.mxu1 }
 0x227   : > { %v595_v26 = vpop.f32.mrf.mxu1 }
 0x229   : > { %v1489_v27 = vpop.f32.mrf.mxu1 }
 0x22b   : > { %v704_v28 = vpop.f32.mrf.mxu1 }
 0x22c   : > { %v710_v29 = vsel %vm551_vm2, %v704_v28, -inf }
 0x22d   : > { %711 = vmax.xlane.f32.xlu0 %v710_v29  ;;  %v1500_v30 = vpop.f32.mrf.mxu1 }
 0x22f   : > { %v707_v31 = vpop.f32.mrf.mxu1 }
 0x231   : > { %v1501_v32 = vpop.f32.mrf.mxu1 }
 0x233   : > { %v815_v33 = vpop.f32.mrf.mxu1 }
 0x234   : > { %v821_v34 = vsel %vm551_vm2, %v815_v33, -inf }
 0x235   : > { %822 = vmax.xlane.f32.xlu0 %v821_v34  ;;  %v1512_v35 = vpop.f32.mrf.mxu1  ;;  %v1619_v34 = vld [vmem:[%s2078_s3] sm:$0xff]  }
 0x237   : > { %v818_v36 = vpop.f32.mrf.mxu1 }
 0x239   : > { %v1513_v37 = vpop.f32.mrf.mxu1 }
 0x23b   : > { %v926_v38 = vpop.f32.mrf.mxu1 }
 0x23c   : > { %v932_v39 = vsel %vm551_vm2, %v926_v38, -inf }
 0x23d   : > { %933 = vmax.xlane.f32.xlu1 %v932_v39  ;;  %v1524_v40 = vpop.f32.mrf.mxu1 }
 0x23f   : > { %v929_v41 = vpop.f32.mrf.mxu1 }
 0x241   : > { %v1525_v42 = vpop.f32.mrf.mxu1 }
 0x2ae   : > { %v600_v43 = vpop.xlane.xlu1 %599 }
 0x2af   : > { %v601_v44 = vsub.f32 %v592_v23, %v600_v43 }
 0x2b1   : > { %v602_v45 = vmul.f32 1.442695, %v601_v44 }
 0x2b3   : > { %1626 = vpow2.f32 %v602_v45 }
 0x2b6   : > { %v712_v46 = vpop.xlane.xlu0 %711 }
 0x2b7   : > { %v713_v47 = vsub.f32 %v704_v28, %v712_v46 }
 0x2b9   : > { %v714_v48 = vmul.f32 1.442695, %v713_v47 }
 0x2bb   : > { %1628 = vpow2.f32 %v714_v48 }
 0x2be   : > { %v823_v49 = vpop.xlane.xlu0 %822 }
 0x2bf   : > { %v824_v50 = vsub.f32 %v815_v33, %v823_v49  ;;  %v1618_v33 = vld [vmem:[%s2078_s3 + $0x8] sm:$0xff]  }
 0x2c0   : > { %v1627_v51 = vpop.eup %1626  ;;  %1533 = vmatpush3.bf16.msra.mxu1 %v1618_v33 }
 0x2c1   : > { %v825_v52 = vmul.f32 1.442695, %v824_v50  ;;  %v604_v53 = vsel %vm551_vm2, %v1627_v51, 0.0  ;;  %1534 = vmatprep.subr.bf16.mxu1 %v1708_v1  ;;  %v1423_v50 = vld [vmem:[%s2079_s4] ss:$0 sm:$0xff] }
 0x2c2   : > { %605 = vadd.xlane.f32.xlu0 %v604_v53 }
 0x2c3   : > { %1630 = vpow2.f32 %v825_v52 }
 0x2c4   : > { %1535 = vmatpush3.bf16.msra.mxu1 %v1619_v34 }
 0x2c5   : > { %1548 = vmatprep.subr.bf16.mxu1 %v1708_v1 }
 0x2c6   : > { %v934_v58 = vpop.xlane.xlu1 %933 }
 0x2c7   : > { %v935_v59 = vsub.f32 %v926_v38, %v934_v58 }
 0x2c8   : > { %v1629_v54 = vpop.eup %1628 }
 0x2c9   : > { %v716_v55 = vsel %vm551_vm2, %v1629_v54, 0.0  ;;  %v936_v60 = vmul.f32 1.442695, %v935_v59 }
 0x2ca   : > { %717 = vadd.xlane.f32.xlu1 %v716_v55 }
 0x2cb   : > { %1632 = vpow2.f32 %v936_v60 }
 0x2d0   : > { %v1631_v56 = vpop.eup %1630 }
 0x2d1   : > { %v827_v57 = vsel %vm551_vm2, %v1631_v56, 0.0 }
 0x2d2   : > { %828 = vadd.xlane.f32.xlu0 %v827_v57 }
 0x2d8   : > { %v1633_v61 = vpop.eup %1632 }
 0x2d9   : > { %v938_v62 = vsel %vm551_vm2, %v1633_v61, 0.0 }
 0x2db   : > { %723 = vrot.lane.b32.xlu1 %v1880_v9, %s1717_s0  ;;  %s1926_s0 = scalar_lea.vmem %s2066_s14, %s1445_s26 }
 0x2e8   : > { %611 = vrot.lane.b32.xlu0 %v1880_v9, %s1718_s20 }
 0x2ec   : > { %945 = vrot.lane.b32.xlu0 %v1880_v9, %s1719_s21 }
 0x2ff   : > { %939 = vadd.xlane.f32.xlu1 %v938_v62 }
 0x310   : > { %834 = vrot.lane.b32.xlu1 %v1880_v9, %s1720_s25  ;;  %s1442_s25 = sshll.u32 %s1821_s17, 7 }
 0x311   : > { %s1313_s4 = scalar_lea.hbm %s2065_s13, %s1442_s25 }
 0x34b   : > { %v606_v63 = vpop.xlane.xlu0 %605 }
 0x34c   : > { %1634 = vrcp.f32 %v606_v63 }
 0x353   : > { %v718_v0 = vpop.xlane.xlu1 %717 }
 0x354   : > { %1636 = vrcp.f32 %v718_v0  ;;  %v1621_v0 = vld [vmem:[%s2080_s5] sm:$0xff]  }
 0x357   : > { %v724_v10 = vpop.permute.xlu1 %723 }
 0x358   : > { %v729_v12 = vsel %vm616_vm4, %v724_v10, 0 }
 0x359   : > { %v1635_v2 = vpop.eup %1634 }
 0x35a   : > { %v609_v4 = vmul.f32 %v1635_v2, %v1627_v51  ;;  %v478_v51 = vunpack.c.l.bf16 %v1870_v3  ;;  %v1620_v3 = vld [vmem:[%s2080_s5 + $0x8] sm:$0xff]   ;;  %v1622_v2 = vld [vmem:[%s2059_s7 + $0x18] sm:$0xff]  }
 0x35b   : > { %v829_v5 = vpop.xlane.xlu0 %828 }
 0x35c   : > { %1638 = vrcp.f32 %v829_v5  ;;  %v610_v6 = vpack.c.bf16 %v609_v4, %v609_v4  ;;  %v1623_v4 = vld [vmem:[%s2059_s7 + $0x10] sm:$0xff]  }
 0x35e   : > { %994 = vst.msk [vmem:[%s1926_s0] sm:$0xf] %vm993_vm3, %v610_v6 }
 0x35f   : > { %v612_v7 = vpop.permute.xlu0 %611 }
 0x360   : > { %v618_v8 = vsel %vm616_vm4, %v612_v7, 0 }
 0x361   : > { %v1637_v9 = vpop.eup %1636  ;;  %1491 = vmatpush3.bf16.msra.mxu0 %v618_v8 }
 0x362   : > { %1502 = vmatprep.subr.bf16.mxu0 %v1708_v1  ;;  %v721_v11 = vmul.f32 %v1637_v9, %v1629_v54  ;;  %v1427_v9 = vld [vmem:[%s2061_s9] ss:$0 sm:$0xff] }
 0x363   : > { %v946_v20 = vpop.permute.xlu0 %945 }
 0x364   : > { %1493 = vmatmul.mubr.msk.bf16.vlgmr.msra.gmra.mxu0 %vm551_vm2, %v610_v6  ;;  %v722_v13 = vpack.c.bf16 %v721_v11, %v721_v11  ;;  %v951_v21 = vsel %vm616_vm4, %v946_v20, 0  ;;  %v1428_v11 = vld [vmem:[%s2062_s10] ss:$0 sm:$0xff] }
 0x365   : > { %1503 = vmatpush3.bf16.msra.mxu0 %v729_v12  ;;  %1504 = vmatprep.mubr.msk.bf16.mxu0 %vm1709_vm0, %v1708_v1 }
 0x366   : > { %995 = vst.msk [vmem:[%s1926_s0 + $0x4] sm:$0xf] %vm993_vm3, %v722_v13  ;;  %1514 = vmatprep.subr.bf16.mxu0 %v1708_v1 }
 0x369   : > { %v1639_v14 = vpop.eup %1638 }
 0x36a   : > { %v832_v15 = vmul.f32 %v1639_v14, %v1631_v56 }
 0x36c   : > { %1505 = vmatmul.mubr.msk.bf16.vlgmr.msra.gmra.mxu0 %vm551_vm2, %v722_v13  ;;  %v833_v16 = vpack.c.bf16 %v832_v15, %v832_v15  ;;  %v1624_v15 = vld [vmem:[%s2059_s7 + $0x8] sm:$0xff]  }
 0x36d   : > { %1516 = vmatprep.mubr.msk.bf16.mxu0 %vm1709_vm0, %v1708_v1 }
 0x36e   : > { %996 = vst.msk [vmem:[%s1926_s0 + $0x8] sm:$0xf] %vm993_vm3, %v833_v16 }
 0x388   : > { %v940_v17 = vpop.xlane.xlu1 %939 }
 0x389   : > { %1640 = vrcp.f32 %v940_v17  ;;  %v1429_v17 = vld [vmem:[%s2058_s6] ss:$0 sm:$0xff] }
 0x38c   : > { %v835_v18 = vpop.permute.xlu1 %834 }
 0x38d   : > { %v840_v19 = vsel %vm616_vm4, %v835_v18, 0 }
 0x38e   : > { %1515 = vmatpush3.bf16.msra.mxu0 %v840_v19 }
 0x38f   : > { %1526 = vmatprep.subr.bf16.mxu0 %v1708_v1 }
 0x391   : > { %1517 = vmatmul.mubr.msk.bf16.vlgmr.msra.gmra.mxu0 %vm551_vm2, %v833_v16  ;;  %v1625_v16 = vld [vmem:[%s2059_s7] sm:$0xff]  }
 0x392   : > { %1527 = vmatpush3.bf16.msra.mxu0 %v951_v21  ;;  %1528 = vmatprep.mubr.msk.bf16.mxu0 %vm1709_vm0, %v1708_v1 }
 0x393   : > { %1540 = vmatprep.subr.bf16.mxu0 %v1708_v1 }
 0x396   : > { %v1641_v22 = vpop.eup %1640 }
 0x397   : > { %v943_v23 = vmul.f32 %v1641_v22, %v1633_v61 }
 0x399   : > { %v944_v24 = vpack.c.bf16 %v943_v23, %v943_v23 }
 0x39b   : > { %1529 = vmatmul.mubr.msk.bf16.vlgmr.msra.gmra.mxu0 %vm551_vm2, %v944_v24  ;;  %997 = vst.msk [vmem:[%s1926_s0 + $0xc] sm:$0xf] %vm993_vm3, %v944_v24 }
 0x39c   : > { %1544 = vmatprep.mubr.msk.bf16.mxu0 %vm1709_vm0, %v1708_v1  ;;  %1541 = vmatpush3.bf16.msra.mxu0 %v1620_v3 }
 0x39d   : > { %1542 = vmatprep.subr.bf16.mxu0 %v1708_v1 }
 0x3a0   : > { %1543 = vmatpush3.bf16.msra.mxu0 %v1621_v0 }
 0x424   : > { %v654_v25 = vpop.f32.mrf.mxu0 }
 0x426   : > { %v1494_v26 = vpop.f32.mrf.mxu0 }
 0x428   : > { %v657_v27 = vpop.f32.mrf.mxu0 }
 0x42a   : > { %v1495_v28 = vpop.f32.mrf.mxu0 }
 0x42c   : > { %v765_v29 = vpop.f32.mrf.mxu0 }
 0x42d   : > { %999 = vrot.lane.b32.xlu1 %v765_v29, %s1721_s18  ;;  %s1724_s18 = smov [#allocation2]  }
 0x42e   : > { %v1506_v30 = vpop.f32.mrf.mxu0  ;;  %s1650_s20 = sshll.u32 %s1724_s18, 4  ;;  %s1651_s20 = int_to_ptr.vmem [resolvable:$false] %s1650_s20 }
 0x42f   : > { %s1652_s17 = scalar_lea.vmem %s1651_s20, 256 }
 0x430   : > { %v768_v31 = vpop.f32.mrf.mxu0 }
 0x432   : > { %v1507_v32 = vpop.f32.mrf.mxu0 }
 0x451   : > { %v876_v35 = vpop.f32.mrf.mxu0 }
 0x452   : > { %1003 = vrot.lane.b32.xlu0 %v876_v35, %s1722_s27  ;;  %s457_s27 = sand.u32 1, %s1698_s30  }
 0x453   : > { %v1518_v36 = vpop.f32.mrf.mxu0  ;;  %s1297_s5 = scalar_lea.sflag [#allocation3], %s457_s27 }
 0x455   : > { %v879_v37 = vpop.f32.mrf.mxu0 }
 0x457   : > { %v1519_v38 = vpop.f32.mrf.mxu0 }
 0x45b   : > { %v987_v39 = vpop.f32.mrf.mxu0 }
 0x45c   : > { %1007 = vrot.lane.b32.xlu1 %v987_v39, %s1723_s28  ;;  %s1406_s28 = sshll.u32 %s457_s27, 3 }
 0x45d   : > { %v1530_v40 = vpop.f32.mrf.mxu0  ;;  %s459_s26 = scalar_lea.vmem [#allocation2], %s1406_s28 }
 0x45e   : > { %s1315_s1 = sshll.u32 %s459_s26, 4  ;;  %s1316_s1 = int_to_ptr.vmem [resolvable:$true] %s1315_s1 }
 0x45f   : > { %v990_v41 = vpop.f32.mrf.mxu0  ;;  %s1646_s0 = scalar_lea.vmem %s1316_s1, 128  ;;  %p1653_p0 = scmp.lt.s32.totalorder %s1316_s1, %s1651_s20 }
 0x460   : > { %v1439_v41 = vld [vmem:[%s2063_s11] ss:$0 sm:$0xff]  ;;  %p1647_p11 = scmp.ne.s32.totalorder %s1316_s1, %s1646_s0  ;;  %p1654_p1 = scmp.lt.s32.totalorder %s1652_s17, %s1646_s0 }
 0x461   : > { %v1531_v42 = vpop.f32.mrf.mxu0 }
 0x462   : > { %p1648_p12 = pnand %p1647_p11, %p1838_p5  ;;  %p1655_p2 = por %p1654_p1, %p1653_p0 }
 0x464   : > { %p1649_p13 = pneg %p1648_p12 }
 0x466   : > { %p1656_p3 = pnand %p1655_p2, %p1649_p13 }
 0x49f   : > { %v1000_v43 = vpop.permute.xlu1 %999 }
 0x4a0   : > { %v1010_v45 = vsel %vm551_vm2, %v654_v25, %v1000_v43  ;;  %v1440_v43 = vld [vmem:[%s2064_s12] ss:$0 sm:$0xff] }
 0x4c4   : > { %v1004_v44 = vpop.permute.xlu0 %1003 }
 0x4c5   : > { %v1012_v46 = vsel %vm1011_vm5, %v1010_v45, %v1004_v44 }
 0x4ce   : > { %v1008_v47 = vpop.permute.xlu1 %1007 }
 0x4cf   : > { %v1014_v48 = vsel %vm1013_vm6, %v1012_v46, %v1008_v47 }
 0x4d0   : > { %v1015_v49 = vpack.c.bf16 %v1014_v48, %v1014_v48 }
 0x4d2   : > { %1537 = vmatmul.mubr.msk.bf16.vlgmr.msra.gmra.mxu1 %vm503_vm1, %v1015_v49 }
 0x4d3   : > { %1556 = vmatprep.mubr.msk.bf16.mxu1 %vm1709_vm0, %v1708_v1  ;;  %1549 = vmatpush3.bf16.msra.mxu1 %v1622_v2 }
 0x4d4   : > { %1550 = vmatprep.subr.bf16.mxu1 %v1708_v1 }
 0x4d7   : > { %1551 = vmatpush3.bf16.msra.mxu1 %v1623_v4 }
 0x4d8   : > { %1552 = vmatprep.subr.bf16.mxu1 %v1708_v1 }
 0x4db   : > { %1553 = vmatpush3.bf16.msra.mxu1 %v1624_v15 }
 0x4dc   : > { %1554 = vmatprep.subr.bf16.mxu1 %v1708_v1  ;;  %v1433_v1 = vld [vmem:[%s2060_s8] ss:$0 sm:$0xff] }
 0x4df   : > { %1555 = vmatpush3.bf16.msra.mxu1 %v1625_v16 }
 0x592   : > { %v1076_v52 = vpop.f32.mrf.mxu1 }
 0x593   : > { %v1077_v53 = vadd.f32 %v1423_v50, %v1076_v52 }
 0x594   : > { %v1538_v54 = vpop.f32.mrf.mxu1 }
 0x595   : > { %v1082_v55 = vadd.f32 %v1077_v53, %v478_v51 }
 0x596   : > { %v1079_v56 = vpop.f32.mrf.mxu1 }
 0x597   : > { %v1083_v57 = vsel %vm503_vm1, %v1082_v55, 0.0 }
 0x598   : > { %v1539_v58 = vpop.f32.mrf.mxu1  ;;  %1084 = vadd.xlane.f32.xlu0 %v1083_v57 }
 0x621   : > { %v1085_v59 = vpop.xlane.xlu0 %1084 }
 0x622   : > { %v1087_v60 = vmul.f32 0.03125, %v1085_v59 }
 0x624   : > { %v1088_v61 = vsub.f32 %v1082_v55, %v1087_v60 }
 0x626   : > { %v1089_v62 = vmul.f32 %v1088_v61, %v1088_v61 }
 0x628   : > { %v1090_v63 = vsel %vm503_vm1, %v1089_v62, 0.0 }
 0x629   : > { %1091 = vadd.xlane.f32.xlu1 %v1090_v63 }
 0x6b2   : > { %v1092_v5 = vpop.xlane.xlu1 %1091 }
 0x6b3   : > { %v1093_v6 = vmul.f32 0.03125, %v1092_v5 }
 0x6b5   : > { %v1094_v7 = vadd.f32 1e-05, %v1093_v6 }
 0x6b7   : > { %1642 = vrsqrt.f32 %v1094_v7 }
 0x6c4   : > { %v1643_v8 = vpop.eup %1642 }
 0x6c5   : > { %v1096_v10 = vmul.f32 %v1643_v8, %v1088_v61 }
 0x6c7   : > { %v1104_v12 = vmul.f32 %v1427_v9, %v1096_v10 }
 0x6c9   : > { %v1112_v13 = vadd.f32 %v1428_v11, %v1104_v12 }
 0x6cb   : > { %v1113_v14 = vpack.c.bf16 %v1112_v13, %v1112_v13 }
 0x6cd   : > { %1545 = vmatmul.mubr.msk.bf16.vlgmr.msra.gmra.mxu0 %vm503_vm1, %v1113_v14 }
 0x78d   : > { %v1174_v18 = vpop.f32.mrf.mxu0 }
 0x78e   : > { %v1175_v19 = vadd.f32 %v1429_v17, %v1174_v18 }
 0x78f   : > { %v1546_v20 = vpop.f32.mrf.mxu0 }
 0x790   : > { %v1180_v21 = vmax.f32 %v1175_v19, 0.0 }
 0x791   : > { %v1177_v22 = vpop.f32.mrf.mxu0 }
 0x792   : > { %v1181_v23 = vpack.c.bf16 %v1180_v21, %v1180_v21 }
 0x793   : > { %v1547_v24 = vpop.f32.mrf.mxu0 }
 0x794   : > { %1557 = vmatmul.mubr.msk.bf16.vlgmr.msra.gmra.mxu1 %vm1221_vm7, %v1181_v23 }
 0x854   : > { %v1259_v25 = vpop.f32.mrf.mxu1 }
 0x855   : > { %v1260_v26 = vadd.f32 %v1433_v1, %v1259_v25 }
 0x856   : > { %v1558_v27 = vpop.f32.mrf.mxu1 }
 0x857   : > { %v1265_v28 = vadd.f32 %v1260_v26, %v1112_v13 }
 0x858   : > { %v1262_v29 = vpop.f32.mrf.mxu1 }
 0x859   : > { %v1266_v30 = vsel %vm503_vm1, %v1265_v28, 0.0 }
 0x85a   : > { %1267 = vadd.xlane.f32.xlu0 %v1266_v30  ;;  %v1559_v31 = vpop.f32.mrf.mxu1 }
 0x8e3   : > { %v1268_v32 = vpop.xlane.xlu0 %1267 }
 0x8e4   : > { %v1269_v33 = vmul.f32 0.03125, %v1268_v32 }
 0x8e6   : > { %v1270_v34 = vsub.f32 %v1265_v28, %v1269_v33 }
 0x8e8   : > { %v1271_v35 = vmul.f32 %v1270_v34, %v1270_v34 }
 0x8ea   : > { %v1272_v36 = vsel %vm503_vm1, %v1271_v35, 0.0 }
 0x8eb   : > { %1273 = vadd.xlane.f32.xlu0 %v1272_v36 }
 0x974   : > { %v1274_v37 = vpop.xlane.xlu0 %1273 }
 0x975   : > { %v1275_v38 = vmul.f32 0.03125, %v1274_v37 }
 0x977   : > { %v1276_v39 = vadd.f32 1e-05, %v1275_v38 }
 0x979   : > { %1644 = vrsqrt.f32 %v1276_v39 }
 0x986   : > { %v1645_v40 = vpop.eup %1644 }
 0x987   : > { %v1278_v42 = vmul.f32 %v1645_v40, %v1270_v34 }
 0x989   : > { %v1286_v44 = vmul.f32 %v1439_v41, %v1278_v42 }
 0x98b   : > { %v1294_v45 = vadd.f32 %v1440_v43, %v1286_v44 }
 0x98d   : > { %1295 = vst.msk [vmem:[%s459_s26] sm:$0xff] %vm503_vm1, %v1294_v45 }
 0x98e   : > { %1659 = shalt.err (!%p1656_p3)
}
 0x98f   : > { %s1660_s2 = scalar_lea.hbm %s1313_s4, 128  ;;  %s1664_s28 = scalar_lea.hbm %s2065_s13, 256 }
 0x990   : > { %p1661_p4 = scmp.ne.s32.totalorder %s1313_s4, %s1660_s2  ;;  %p1665_p9 = scmp.lt.s32.totalorder %s1313_s4, %s2065_s13 }
 0x991   : > { %p1666_p10 = scmp.lt.s32.totalorder %s1664_s28, %s1660_s2 }
 0x992   : > { %p1662_p7 = pnand %p1661_p4, %p1838_p5 }
 0x993   : > { %p1667_p11 = por %p1666_p10, %p1665_p9 }
 0x994   : > { %p1663_p8 = pneg %p1662_p7 }
 0x996   : > { %p1668_p12 = pnand %p1667_p11, %p1663_p8 }
 0x998   : > { %1671 = shalt.err (!%p1668_p12)
}
 0x999   : > { %1560 = dma.vmem_to_hbm [thread:$0]  (%p1838_p5), %s1316_s1, 128, %s1313_s4, %s1297_s5  }
 0x99a PF: > { %p1566_p13 = scmp.ge.s32.totalorder %s1706_s16, 2  ;;  %s1330_s26 = sand.u32 1, %s1694_s29  }
 0x99b   : > { %s1331_s0 = scalar_lea.sflag [#allocation3], %s1330_s26 }
 0x99c   : > { %p1563_p0 = pnand %p1566_p13, %p1842_p6 }
 0x99e   : > { %p1564_p1 = pneg %p1563_p0 }
 0x9a0   : > { %1689 = dma.done.wait (%p1564_p1), %s1331_s0, 128  }
 0x9a1   : > { %1691 = vsyncadd (%p1564_p1), %s1331_s0, 4294967168  ;;  %p25_p2 = scmp.ge.s32.totalorder %s1825_s19, 4   ;;  %s2081_s29 = smov %s1698_s30 }
 0x9a2   : > { %s2082_s30 = smov %s1702_s15  ;;  %s2083_s15 = smov %s1836_s22 }
 0x9a3   : > { %s2084_s16 = smov %s1825_s19  ;;  %27 = sbr.rel (!%p25_p2) target bundleno = 10 (0xa), region = 119 }
 0x9a8   :  { %1344 = vsyncpa [#allocation3], 1 }
 0x9a9   :  { %1346 = vsyncpa [#allocation3 + $0x1], 1 }

</bundles_post_ra>
